<compile_context>
chip_gen: v5e
topology: v5e:2x2
jax: 0.10.0
libtpu: 0.0.40
codegen_flags: <defaults>
</compile_context>

<pallas_src>
import functools

import jax
import jax.numpy as jnp
from jax import lax
from jax.experimental import pallas as pl
from jax.experimental.pallas import tpu as pltpu

EPS = 1e-5


def _round_up(x, m):
    return (x + m - 1) // m * m


# ----------------------------- Pallas kernels ------------------------------ #

def bn_relu_kernel(x_ref, gamma_ref, beta_ref, o_ref, *, m_true):
    # x_ref: (Mp, C) f32, rows beyond m_true are zero padding.
    # Training-mode BN over the batch rows; output bf16 (feeds bf16 MXU later).
    x = x_ref[...]
    s1 = jnp.sum(x, axis=0, keepdims=True)
    s2 = jnp.sum(x * x, axis=0, keepdims=True)
    mean = s1 / m_true
    var = s2 / m_true - mean * mean                 # zero pad rows are neutral
    scale = gamma_ref[...] * lax.rsqrt(var + EPS)   # fold gamma into scale
    shift = beta_ref[...] - mean * scale
    o_ref[...] = jnp.maximum(x * scale + shift, 0.0).astype(o_ref.dtype)


def grouped_conv_bn_relu_kernel(p_ref, w_ref, gamma_ref, beta_ref, o_ref,
                                *, num_groups, m_true):
    # Single invocation for ALL groups:
    #   p_ref: (G, Mp, 9*Cg) bf16 im2col patches (group-major)
    #   w_ref: (G, 9*Cg, Cg)  bf16 conv weights
    #   o_ref: (Mp, C)        bf16 = relu(batchnorm(grouped_conv(...)))
    outs = []
    for g in range(num_groups):                      # statically unrolled
        outs.append(jnp.dot(p_ref[g], w_ref[g],
                            preferred_element_type=jnp.float32))
    h = jnp.concatenate(outs, axis=-1)               # (Mp, C) f32, lane dense

    # Fused BN2 (batch stats) + ReLU on the resident f32 accumulator.
    s1 = jnp.sum(h, axis=0, keepdims=True)
    s2 = jnp.sum(h * h, axis=0, keepdims=True)
    mean = s1 / m_true
    var = s2 / m_true - mean * mean                  # zero pad rows are neutral
    scale = gamma_ref[...] * lax.rsqrt(var + EPS)
    shift = beta_ref[...] - mean * scale
    y = jnp.maximum(h * scale + shift, 0.0)
    o_ref[...] = y.astype(o_ref.dtype)


def matmul_cout_kernel(y_ref, w_ref, o_ref):
    # 1x1 conv == matmul over channels; tiled along Cout by the grid.
    o_ref[...] = jnp.dot(y_ref[...], w_ref[...],
                         preferred_element_type=jnp.float32)


# ------------------------------ wrappers ----------------------------------- #

def bn_relu(x2d, gamma, beta, m_true):
    Mp, C = x2d.shape
    return pl.pallas_call(
        functools.partial(bn_relu_kernel, m_true=float(m_true)),
        out_shape=jax.ShapeDtypeStruct((Mp, C), jnp.bfloat16),
    )(x2d, gamma.reshape(1, C), beta.reshape(1, C))


def grouped_conv_bn_relu(patch_g, w_g, gamma, beta, m_true):
    G, Mp, _ = patch_g.shape
    Cg = w_g.shape[-1]
    C = G * Cg
    return pl.pallas_call(
        functools.partial(grouped_conv_bn_relu_kernel,
                          num_groups=G, m_true=float(m_true)),
        out_shape=jax.ShapeDtypeStruct((Mp, C), jnp.bfloat16),
    )(patch_g, w_g, gamma.reshape(1, C), beta.reshape(1, C))


def conv1x1(y2, w2t):
    Mp, C = y2.shape
    Cout = w2t.shape[1]
    tn = min(512, Cout)
    if Cout % tn != 0:
        tn = Cout
    return pl.pallas_call(
        matmul_cout_kernel,
        out_shape=jax.ShapeDtypeStruct((Mp, Cout), jnp.float32),
        grid=(Cout // tn,),
        in_specs=[
            pl.BlockSpec((Mp, C), lambda j: (0, 0)),
            pl.BlockSpec((C, tn), lambda j: (0, j)),
        ],
        out_specs=pl.BlockSpec((Mp, tn), lambda j: (0, j)),
        compiler_params=pltpu.CompilerParams(
            dimension_semantics=("parallel",)),
    )(y2, w2t)


@functools.partial(jax.jit, static_argnames=("groups",))
def forward(x_nchw, gamma1, beta1, w_conv3, gamma2, beta2, w_conv1, *, groups):
    N, C, H, W = x_nchw.shape
    G = groups
    Cg = C // G

    # --- BN1 + ReLU (Pallas, fused stats + normalize), bf16 out ---
    x = jnp.transpose(x_nchw, (0, 2, 3, 1)).reshape(N * H * W, C)
    M1 = N * H * W
    M1p = _round_up(M1, 8)
    if M1p != M1:
        x = jnp.pad(x, ((0, M1p - M1), (0, 0)))
    y = bn_relu(x, gamma1, beta1, m_true=M1)            # (M1p, C) bf16
    y = y[:M1].reshape(N, H, W, C)

    # --- im2col for the grouped 3x3 conv, stride 2, pad 1 (XLA glue) ---
    # TODO(synk): patch extraction (pad + 9 strided slices + transpose) is done
    # as XLA glue on a small bf16 tensor rather than via in-kernel DMA windows.
    OH = (H + 2 - 3) // 2 + 1
    OW = (W + 2 - 3) // 2 + 1
    yp = jnp.pad(y, ((0, 0), (1, 1), (1, 1), (0, 0)))   # pad AFTER bn+relu
    cols = []
    for kh in range(3):
        for kw in range(3):
            cols.append(lax.slice(
                yp,
                (0, kh, kw, 0),
                (N, kh + 2 * (OH - 1) + 1, kw + 2 * (OW - 1) + 1, C),
                (1, 2, 2, 1)))
    patch = jnp.stack(cols, axis=3)                     # (N, OH, OW, 9, C) bf16
    M2 = N * OH * OW
    patch = patch.reshape(M2, 9, G, Cg)
    patch = jnp.transpose(patch, (2, 0, 1, 3)).reshape(G, M2, 9 * Cg)
    M2p = _round_up(M2, 8)
    if M2p != M2:
        patch = jnp.pad(patch, ((0, 0), (0, M2p - M2), (0, 0)))

    # PyTorch weight (C_out, C_in/G, 3, 3) -> per-group (9*Cg_in, Cg_out), bf16
    wr = w_conv3.reshape(G, Cg, Cg, 3, 3)               # (G, oc, ic, kh, kw)
    wr = jnp.transpose(wr, (0, 3, 4, 2, 1)).reshape(G, 9 * Cg, Cg)
    wr = wr.astype(jnp.bfloat16)

    # --- grouped conv (single kernel invocation) fused with BN2 + ReLU ---
    y2 = grouped_conv_bn_relu(patch, wr, gamma2, beta2, m_true=M2)  # (M2p,C) bf16

    # --- 1x1 conv, Cout-tiled matmul ---
    w2t = jnp.transpose(w_conv1[:, :, 0, 0]).astype(jnp.bfloat16)   # (Cin, Cout)
    out = conv1x1(y2, w2t)                                          # (M2p, C) f32

    out = out[:M2].reshape(N, OH, OW, C)
    return jnp.transpose(out, (0, 3, 1, 2))             # NCHW


# ------------------------- pure-JAX reference ------------------------------ #

def reference(x_nchw, gamma1, beta1, w_conv3, gamma2, beta2, w_conv1, groups):
    def bn_train(x, gamma, beta):
        mean = jnp.mean(x, axis=(0, 2, 3), keepdims=True)
        var = jnp.mean((x - mean) ** 2, axis=(0, 2, 3), keepdims=True)
        return ((x - mean) * lax.rsqrt(var + EPS) * gamma.reshape(1, -1, 1, 1)
                + beta.reshape(1, -1, 1, 1))

    y = jax.nn.relu(bn_train(x_nchw, gamma1, beta1))
    h = lax.conv_general_dilated(
        y, w_conv3, window_strides=(2, 2), padding=((1, 1), (1, 1)),
        dimension_numbers=("NCHW", "OIHW", "NCHW"), feature_group_count=groups)
    h = jax.nn.relu(bn_train(h, gamma2, beta2))
    return lax.conv_general_dilated(
        h, w_conv1, window_strides=(1, 1), padding=((0, 0), (0, 0)),
        dimension_numbers=("NCHW", "OIHW", "NCHW"))


# --------------------------------- main ------------------------------------ #

if __name__ == "__main__":
    # Scaled-down shapes (original module: N=1, C=2048, H=W=14, groups=32).
    N, C, H, W, G = 2, 128, 8, 8, 32

    key = jax.random.PRNGKey(0)
    ks = jax.random.split(key, 7)
    x = jax.random.normal(ks[0], (N, C, H, W), jnp.float32)
    gamma1 = 1.0 + 0.1 * jax.random.normal(ks[1], (C,), jnp.float32)
    beta1 = 0.1 * jax.random.normal(ks[2], (C,), jnp.float32)
    w_conv3 = 0.05 * jax.random.normal(ks[3], (C, C // G, 3, 3), jnp.float32)
    gamma2 = 1.0 + 0.1 * jax.random.normal(ks[4], (C,), jnp.float32)
    beta2 = 0.1 * jax.random.normal(ks[5], (C,), jnp.float32)
    w_conv1 = 0.05 * jax.random.normal(ks[6], (C, C, 1, 1), jnp.float32)

    out = forward(x, gamma1, beta1, w_conv3, gamma2, beta2, w_conv1, groups=G)
    out = jax.block_until_ready(out)

    ref = reference(x, gamma1, beta1, w_conv3, gamma2, beta2, w_conv1, G)
    assert out.shape == (N, C, H // 2, W // 2), out.shape
    # bf16 MXU operands (per perf guidance) => compare with bf16-level tolerance
    assert jnp.allclose(out, ref, rtol=2e-2, atol=2e-2), \
        float(jnp.max(jnp.abs(out - ref)))

    print("KERNEL_OK")
</pallas_src>

<mosaic_0001>
module attributes {stable_mosaic.version = 11 : i64} {
  func.func @bn_relu_kernel(%arg0: memref<128x128xf32, #tpu.memory_space<vmem>>, %arg1: memref<1x128xf32, #tpu.memory_space<vmem>>, %arg2: memref<1x128xf32, #tpu.memory_space<vmem>>, %arg3: memref<128x128xbf16, #tpu.memory_space<vmem>>) attributes {dimension_semantics = [], scalar_prefetch = 0 : i64, scratch_operands = 0 : i64, tpu.core_type = #tpu.core_type<tc>} {
    %c0 = arith.constant 0 : index
    %c0_0 = arith.constant 0 : index
    %0 = vector.load %arg0[%c0, %c0_0] : memref<128x128xf32, #tpu.memory_space<vmem>>, vector<128x128xf32>
    %cst = arith.constant dense<0.000000e+00> : vector<128xf32>
    %1 = vector.multi_reduction <add>, %0, %cst [0] : vector<128x128xf32> to vector<128xf32>
    %2 = vector.shape_cast %1 : vector<128xf32> to vector<1x128xf32>
    %3 = arith.mulf %0, %0 : vector<128x128xf32>
    %cst_1 = arith.constant dense<0.000000e+00> : vector<128xf32>
    %4 = vector.multi_reduction <add>, %3, %cst_1 [0] : vector<128x128xf32> to vector<128xf32>
    %5 = vector.shape_cast %4 : vector<128xf32> to vector<1x128xf32>
    %cst_2 = arith.constant 1.280000e+02 : f32
    %6 = vector.broadcast %cst_2 : f32 to vector<1x128xf32>
    %7 = arith.divf %2, %6 : vector<1x128xf32>
    %cst_3 = arith.constant 1.280000e+02 : f32
    %8 = vector.broadcast %cst_3 : f32 to vector<1x128xf32>
    %9 = arith.divf %5, %8 : vector<1x128xf32>
    %10 = arith.mulf %7, %7 : vector<1x128xf32>
    %11 = arith.subf %9, %10 : vector<1x128xf32>
    %c0_4 = arith.constant 0 : index
    %c0_5 = arith.constant 0 : index
    %12 = vector.load %arg1[%c0_4, %c0_5] : memref<1x128xf32, #tpu.memory_space<vmem>>, vector<1x128xf32>
    %cst_6 = arith.constant 9.99999974E-6 : f32
    %13 = vector.broadcast %cst_6 : f32 to vector<1x128xf32>
    %14 = arith.addf %11, %13 : vector<1x128xf32>
    %15 = math.rsqrt %14 : vector<1x128xf32>
    %16 = arith.mulf %12, %15 : vector<1x128xf32>
    %c0_7 = arith.constant 0 : index
    %c0_8 = arith.constant 0 : index
    %17 = vector.load %arg2[%c0_7, %c0_8] : memref<1x128xf32, #tpu.memory_space<vmem>>, vector<1x128xf32>
    %18 = arith.mulf %7, %16 : vector<1x128xf32>
    %19 = arith.subf %17, %18 : vector<1x128xf32>
    %20 = vector.broadcast %16 : vector<1x128xf32> to vector<128x128xf32>
    %21 = arith.mulf %0, %20 : vector<128x128xf32>
    %22 = vector.broadcast %19 : vector<1x128xf32> to vector<128x128xf32>
    %23 = arith.addf %21, %22 : vector<128x128xf32>
    %cst_9 = arith.constant 0.000000e+00 : f32
    %24 = vector.broadcast %cst_9 : f32 to vector<128x128xf32>
    %25 = arith.maximumf %23, %24 : vector<128x128xf32>
    %26 = arith.truncf %25 : vector<128x128xf32> to vector<128x128xbf16>
    %c0_10 = arith.constant 0 : index
    %c0_11 = arith.constant 0 : index
    %27 = vector.load %arg3[%c0_10, %c0_11] : memref<128x128xbf16, #tpu.memory_space<vmem>>, vector<128x128xbf16>
    tpu.vector_store %arg3[%c0_10, %c0_11], %26 {strides = array<i32>} : memref<128x128xbf16, #tpu.memory_space<vmem>>, vector<128x128xbf16>,
    return
  }
}

module attributes {stable_mosaic.version = 11 : i64} {
  func.func @grouped_conv_bn_relu_kernel(%arg0: memref<32x32x36xbf16, #tpu.memory_space<vmem>>, %arg1: memref<32x36x4xbf16, #tpu.memory_space<vmem>>, %arg2: memref<1x128xf32, #tpu.memory_space<vmem>>, %arg3: memref<1x128xf32, #tpu.memory_space<vmem>>, %arg4: memref<32x128xbf16, #tpu.memory_space<vmem>>) attributes {dimension_semantics = [], scalar_prefetch = 0 : i64, scratch_operands = 0 : i64, tpu.core_type = #tpu.core_type<tc>} {
    %c0 = arith.constant 0 : index
    %c0_0 = arith.constant 0 : index
    %c0_1 = arith.constant 0 : index
    %0 = vector.load %arg0[%c0, %c0_0, %c0_1] : memref<32x32x36xbf16, #tpu.memory_space<vmem>>, vector<1x32x36xbf16>
    %1 = vector.shape_cast %0 : vector<1x32x36xbf16> to vector<32x36xbf16>
    %c0_2 = arith.constant 0 : index
    %c0_3 = arith.constant 0 : index
    %c0_4 = arith.constant 0 : index
    %2 = vector.load %arg1[%c0_2, %c0_3, %c0_4] : memref<32x36x4xbf16, #tpu.memory_space<vmem>>, vector<1x36x4xbf16>
    %3 = vector.shape_cast %2 : vector<1x36x4xbf16> to vector<36x4xbf16>
    %cst = arith.constant dense<0.000000e+00> : vector<32x4xf32>
    %4 = tpu.matmul %1, %3, %cst {dimension_numbers = #tpu.dot_dimension_numbers<[1], [0], [0], [1], [0, 0, 1, 1], [], []>} : vector<32x36xbf16>, vector<36x4xbf16>, vector<32x4xf32> -> vector<32x4xf32>
    %c1 = arith.constant 1 : index
    %c0_5 = arith.constant 0 : index
    %c0_6 = arith.constant 0 : index
    %5 = vector.load %arg0[%c1, %c0_5, %c0_6] : memref<32x32x36xbf16, #tpu.memory_space<vmem>>, vector<1x32x36xbf16>
    %6 = vector.shape_cast %5 : vector<1x32x36xbf16> to vector<32x36xbf16>
    %c1_7 = arith.constant 1 : index
    %c0_8 = arith.constant 0 : index
    %c0_9 = arith.constant 0 : index
    %7 = vector.load %arg1[%c1_7, %c0_8, %c0_9] : memref<32x36x4xbf16, #tpu.memory_space<vmem>>, vector<1x36x4xbf16>
    %8 = vector.shape_cast %7 : vector<1x36x4xbf16> to vector<36x4xbf16>
    %cst_10 = arith.constant dense<0.000000e+00> : vector<32x4xf32>
    %9 = tpu.matmul %6, %8, %cst_10 {dimension_numbers = #tpu.dot_dimension_numbers<[1], [0], [0], [1], [0, 0, 1, 1], [], []>} : vector<32x36xbf16>, vector<36x4xbf16>, vector<32x4xf32> -> vector<32x4xf32>
    %c2 = arith.constant 2 : index
    %c0_11 = arith.constant 0 : index
    %c0_12 = arith.constant 0 : index
    %10 = vector.load %arg0[%c2, %c0_11, %c0_12] : memref<32x32x36xbf16, #tpu.memory_space<vmem>>, vector<1x32x36xbf16>
    %11 = vector.shape_cast %10 : vector<1x32x36xbf16> to vector<32x36xbf16>
    %c2_13 = arith.constant 2 : index
    %c0_14 = arith.constant 0 : index
    %c0_15 = arith.constant 0 : index
    %12 = vector.load %arg1[%c2_13, %c0_14, %c0_15] : memref<32x36x4xbf16, #tpu.memory_space<vmem>>, vector<1x36x4xbf16>
    %13 = vector.shape_cast %12 : vector<1x36x4xbf16> to vector<36x4xbf16>
    %cst_16 = arith.constant dense<0.000000e+00> : vector<32x4xf32>
    %14 = tpu.matmul %11, %13, %cst_16 {dimension_numbers = #tpu.dot_dimension_numbers<[1], [0], [0], [1], [0, 0, 1, 1], [], []>} : vector<32x36xbf16>, vector<36x4xbf16>, vector<32x4xf32> -> vector<32x4xf32>
    %c3 = arith.constant 3 : index
    %c0_17 = arith.constant 0 : index
    %c0_18 = arith.constant 0 : index
    %15 = vector.load %arg0[%c3, %c0_17, %c0_18] : memref<32x32x36xbf16, #tpu.memory_space<vmem>>, vector<1x32x36xbf16>
    %16 = vector.shape_cast %15 : vector<1x32x36xbf16> to vector<32x36xbf16>
    %c3_19 = arith.constant 3 : index
    %c0_20 = arith.constant 0 : index
    %c0_21 = arith.constant 0 : index
    %17 = vector.load %arg1[%c3_19, %c0_20, %c0_21] : memref<32x36x4xbf16, #tpu.memory_space<vmem>>, vector<1x36x4xbf16>
    %18 = vector.shape_cast %17 : vector<1x36x4xbf16> to vector<36x4xbf16>
    %cst_22 = arith.constant dense<0.000000e+00> : vector<32x4xf32>
    %19 = tpu.matmul %16, %18, %cst_22 {dimension_numbers = #tpu.dot_dimension_numbers<[1], [0], [0], [1], [0, 0, 1, 1], [], []>} : vector<32x36xbf16>, vector<36x4xbf16>, vector<32x4xf32> -> vector<32x4xf32>
    %c4 = arith.constant 4 : index
    %c0_23 = arith.constant 0 : index
    %c0_24 = arith.constant 0 : index
    %20 = vector.load %arg0[%c4, %c0_23, %c0_24] : memref<32x32x36xbf16, #tpu.memory_space<vmem>>, vector<1x32x36xbf16>
    %21 = vector.shape_cast %20 : vector<1x32x36xbf16> to vector<32x36xbf16>
    %c4_25 = arith.constant 4 : index
    %c0_26 = arith.constant 0 : index
    %c0_27 = arith.constant 0 : index
    %22 = vector.load %arg1[%c4_25, %c0_26, %c0_27] : memref<32x36x4xbf16, #tpu.memory_space<vmem>>, vector<1x36x4xbf16>
    %23 = vector.shape_cast %22 : vector<1x36x4xbf16> to vector<36x4xbf16>
    %cst_28 = arith.constant dense<0.000000e+00> : vector<32x4xf32>
    %24 = tpu.matmul %21, %23, %cst_28 {dimension_numbers = #tpu.dot_dimension_numbers<[1], [0], [0], [1], [0, 0, 1, 1], [], []>} : vector<32x36xbf16>, vector<36x4xbf16>, vector<32x4xf32> -> vector<32x4xf32>
    %c5 = arith.constant 5 : index
    %c0_29 = arith.constant 0 : index
    %c0_30 = arith.constant 0 : index
    %25 = vector.load %arg0[%c5, %c0_29, %c0_30] : memref<32x32x36xbf16, #tpu.memory_space<vmem>>, vector<1x32x36xbf16>
    %26 = vector.shape_cast %25 : vector<1x32x36xbf16> to vector<32x36xbf16>
    %c5_31 = arith.constant 5 : index
    %c0_32 = arith.constant 0 : index
    %c0_33 = arith.constant 0 : index
    %27 = vector.load %arg1[%c5_31, %c0_32, %c0_33] : memref<32x36x4xbf16, #tpu.memory_space<vmem>>, vector<1x36x4xbf16>
    %28 = vector.shape_cast %27 : vector<1x36x4xbf16> to vector<36x4xbf16>
    %cst_34 = arith.constant dense<0.000000e+00> : vector<32x4xf32>
    %29 = tpu.matmul %26, %28, %cst_34 {dimension_numbers = #tpu.dot_dimension_numbers<[1], [0], [0], [1], [0, 0, 1, 1], [], []>} : vector<32x36xbf16>, vector<36x4xbf16>, vector<32x4xf32> -> vector<32x4xf32>
    %c6 = arith.constant 6 : index
    %c0_35 = arith.constant 0 : index
    %c0_36 = arith.constant 0 : index
    %30 = vector.load %arg0[%c6, %c0_35, %c0_36] : memref<32x32x36xbf16, #tpu.memory_space<vmem>>, vector<1x32x36xbf16>
    %31 = vector.shape_cast %30 : vector<1x32x36xbf16> to vector<32x36xbf16>
    %c6_37 = arith.constant 6 : index
    %c0_38 = arith.constant 0 : index
    %c0_39 = arith.constant 0 : index
    %32 = vector.load %arg1[%c6_37, %c0_38, %c0_39] : memref<32x36x4xbf16, #tpu.memory_space<vmem>>, vector<1x36x4xbf16>
    %33 = vector.shape_cast %32 : vector<1x36x4xbf16> to vector<36x4xbf16>
    %cst_40 = arith.constant dense<0.000000e+00> : vector<32x4xf32>
    %34 = tpu.matmul %31, %33, %cst_40 {dimension_numbers = #tpu.dot_dimension_numbers<[1], [0], [0], [1], [0, 0, 1, 1], [], []>} : vector<32x36xbf16>, vector<36x4xbf16>, vector<32x4xf32> -> vector<32x4xf32>
    %c7 = arith.constant 7 : index
    %c0_41 = arith.constant 0 : index
    %c0_42 = arith.constant 0 : index
    %35 = vector.load %arg0[%c7, %c0_41, %c0_42] : memref<32x32x36xbf16, #tpu.memory_space<vmem>>, vector<1x32x36xbf16>
    %36 = vector.shape_cast %35 : vector<1x32x36xbf16> to vector<32x36xbf16>
    %c7_43 = arith.constant 7 : index
    %c0_44 = arith.constant 0 : index
    %c0_45 = arith.constant 0 : index
    %37 = vector.load %arg1[%c7_43, %c0_44, %c0_45] : memref<32x36x4xbf16, #tpu.memory_space<vmem>>, vector<1x36x4xbf16>
    %38 = vector.shape_cast %37 : vector<1x36x4xbf16> to vector<36x4xbf16>
    %cst_46 = arith.constant dense<0.000000e+00> : vector<32x4xf32>
    %39 = tpu.matmul %36, %38, %cst_46 {dimension_numbers = #tpu.dot_dimension_numbers<[1], [0], [0], [1], [0, 0, 1, 1], [], []>} : vector<32x36xbf16>, vector<36x4xbf16>, vector<32x4xf32> -> vector<32x4xf32>
    %c8 = arith.constant 8 : index
    %c0_47 = arith.constant 0 : index
    %c0_48 = arith.constant 0 : index
    %40 = vector.load %arg0[%c8, %c0_47, %c0_48] : memref<32x32x36xbf16, #tpu.memory_space<vmem>>, vector<1x32x36xbf16>
    %41 = vector.shape_cast %40 : vector<1x32x36xbf16> to vector<32x36xbf16>
    %c8_49 = arith.constant 8 : index
    %c0_50 = arith.constant 0 : index
    %c0_51 = arith.constant 0 : index
    %42 = vector.load %arg1[%c8_49, %c0_50, %c0_51] : memref<32x36x4xbf16, #tpu.memory_space<vmem>>, vector<1x36x4xbf16>
    %43 = vector.shape_cast %42 : vector<1x36x4xbf16> to vector<36x4xbf16>
    %cst_52 = arith.constant dense<0.000000e+00> : vector<32x4xf32>
    %44 = tpu.matmul %41, %43, %cst_52 {dimension_numbers = #tpu.dot_dimension_numbers<[1], [0], [0], [1], [0, 0, 1, 1], [], []>} : vector<32x36xbf16>, vector<36x4xbf16>, vector<32x4xf32> -> vector<32x4xf32>
    %c9 = arith.constant 9 : index
    %c0_53 = arith.constant 0 : index
    %c0_54 = arith.constant 0 : index
    %45 = vector.load %arg0[%c9, %c0_53, %c0_54] : memref<32x32x36xbf16, #tpu.memory_space<vmem>>, vector<1x32x36xbf16>
    %46 = vector.shape_cast %45 : vector<1x32x36xbf16> to vector<32x36xbf16>
    %c9_55 = arith.constant 9 : index
    %c0_56 = arith.constant 0 : index
    %c0_57 = arith.constant 0 : index
    %47 = vector.load %arg1[%c9_55, %c0_56, %c0_57] : memref<32x36x4xbf16, #tpu.memory_space<vmem>>, vector<1x36x4xbf16>
    %48 = vector.shape_cast %47 : vector<1x36x4xbf16> to vector<36x4xbf16>
    %cst_58 = arith.constant dense<0.000000e+00> : vector<32x4xf32>
    %49 = tpu.matmul %46, %48, %cst_58 {dimension_numbers = #tpu.dot_dimension_numbers<[1], [0], [0], [1], [0, 0, 1, 1], [], []>} : vector<32x36xbf16>, vector<36x4xbf16>, vector<32x4xf32> -> vector<32x4xf32>
    %c10 = arith.constant 10 : index
    %c0_59 = arith.constant 0 : index
    %c0_60 = arith.constant 0 : index
    %50 = vector.load %arg0[%c10, %c0_59, %c0_60] : memref<32x32x36xbf16, #tpu.memory_space<vmem>>, vector<1x32x36xbf16>
    %51 = vector.shape_cast %50 : vector<1x32x36xbf16> to vector<32x36xbf16>
    %c10_61 = arith.constant 10 : index
    %c0_62 = arith.constant 0 : index
    %c0_63 = arith.constant 0 : index
    %52 = vector.load %arg1[%c10_61, %c0_62, %c0_63] : memref<32x36x4xbf16, #tpu.memory_space<vmem>>, vector<1x36x4xbf16>
    %53 = vector.shape_cast %52 : vector<1x36x4xbf16> to vector<36x4xbf16>
    %cst_64 = arith.constant dense<0.000000e+00> : vector<32x4xf32>
    %54 = tpu.matmul %51, %53, %cst_64 {dimension_numbers = #tpu.dot_dimension_numbers<[1], [0], [0], [1], [0, 0, 1, 1], [], []>} : vector<32x36xbf16>, vector<36x4xbf16>, vector<32x4xf32> -> vector<32x4xf32>
    %c11 = arith.constant 11 : index
    %c0_65 = arith.constant 0 : index
    %c0_66 = arith.constant 0 : index
    %55 = vector.load %arg0[%c11, %c0_65, %c0_66] : memref<32x32x36xbf16, #tpu.memory_space<vmem>>, vector<1x32x36xbf16>
    %56 = vector.shape_cast %55 : vector<1x32x36xbf16> to vector<32x36xbf16>
    %c11_67 = arith.constant 11 : index
    %c0_68 = arith.constant 0 : index
    %c0_69 = arith.constant 0 : index
    %57 = vector.load %arg1[%c11_67, %c0_68, %c0_69] : memref<32x36x4xbf16, #tpu.memory_space<vmem>>, vector<1x36x4xbf16>
    %58 = vector.shape_cast %57 : vector<1x36x4xbf16> to vector<36x4xbf16>
    %cst_70 = arith.constant dense<0.000000e+00> : vector<32x4xf32>
    %59 = tpu.matmul %56, %58, %cst_70 {dimension_numbers = #tpu.dot_dimension_numbers<[1], [0], [0], [1], [0, 0, 1, 1], [], []>} : vector<32x36xbf16>, vector<36x4xbf16>, vector<32x4xf32> -> vector<32x4xf32>
    %c12 = arith.constant 12 : index
    %c0_71 = arith.constant 0 : index
    %c0_72 = arith.constant 0 : index
    %60 = vector.load %arg0[%c12, %c0_71, %c0_72] : memref<32x32x36xbf16, #tpu.memory_space<vmem>>, vector<1x32x36xbf16>
    %61 = vector.shape_cast %60 : vector<1x32x36xbf16> to vector<32x36xbf16>
    %c12_73 = arith.constant 12 : index
    %c0_74 = arith.constant 0 : index
    %c0_75 = arith.constant 0 : index
    %62 = vector.load %arg1[%c12_73, %c0_74, %c0_75] : memref<32x36x4xbf16, #tpu.memory_space<vmem>>, vector<1x36x4xbf16>
    %63 = vector.shape_cast %62 : vector<1x36x4xbf16> to vector<36x4xbf16>
    %cst_76 = arith.constant dense<0.000000e+00> : vector<32x4xf32>
    %64 = tpu.matmul %61, %63, %cst_76 {dimension_numbers = #tpu.dot_dimension_numbers<[1], [0], [0], [1], [0, 0, 1, 1], [], []>} : vector<32x36xbf16>, vector<36x4xbf16>, vector<32x4xf32> -> vector<32x4xf32>
    %c13 = arith.constant 13 : index
    %c0_77 = arith.constant 0 : index
    %c0_78 = arith.constant 0 : index
    %65 = vector.load %arg0[%c13, %c0_77, %c0_78] : memref<32x32x36xbf16, #tpu.memory_space<vmem>>, vector<1x32x36xbf16>
    %66 = vector.shape_cast %65 : vector<1x32x36xbf16> to vector<32x36xbf16>
    %c13_79 = arith.constant 13 : index
    %c0_80 = arith.constant 0 : index
    %c0_81 = arith.constant 0 : index
    %67 = vector.load %arg1[%c13_79, %c0_80, %c0_81] : memref<32x36x4xbf16, #tpu.memory_space<vmem>>, vector<1x36x4xbf16>
    %68 = vector.shape_cast %67 : vector<1x36x4xbf16> to vector<36x4xbf16>
    %cst_82 = arith.constant dense<0.000000e+00> : vector<32x4xf32>
    %69 = tpu.matmul %66, %68, %cst_82 {dimension_numbers = #tpu.dot_dimension_numbers<[1], [0], [0], [1], [0, 0, 1, 1], [], []>} : vector<32x36xbf16>, vector<36x4xbf16>, vector<32x4xf32> -> vector<32x4xf32>
    %c14 = arith.constant 14 : index
    %c0_83 = arith.constant 0 : index
    %c0_84 = arith.constant 0 : index
    %70 = vector.load %arg0[%c14, %c0_83, %c0_84] : memref<32x32x36xbf16, #tpu.memory_space<vmem>>, vector<1x32x36xbf16>
    %71 = vector.shape_cast %70 : vector<1x32x36xbf16> to vector<32x36xbf16>
    %c14_85 = arith.constant 14 : index
    %c0_86 = arith.constant 0 : index
    %c0_87 = arith.constant 0 : index
    %72 = vector.load %arg1[%c14_85, %c0_86, %c0_87] : memref<32x36x4xbf16, #tpu.memory_space<vmem>>, vector<1x36x4xbf16>
    %73 = vector.shape_cast %72 : vector<1x36x4xbf16> to vector<36x4xbf16>
    %cst_88 = arith.constant dense<0.000000e+00> : vector<32x4xf32>
    %74 = tpu.matmul %71, %73, %cst_88 {dimension_numbers = #tpu.dot_dimension_numbers<[1], [0], [0], [1], [0, 0, 1, 1], [], []>} : vector<32x36xbf16>, vector<36x4xbf16>, vector<32x4xf32> -> vector<32x4xf32>
    %c15 = arith.constant 15 : index
    %c0_89 = arith.constant 0 : index
    %c0_90 = arith.constant 0 : index
    %75 = vector.load %arg0[%c15, %c0_89, %c0_90] : memref<32x32x36xbf16, #tpu.memory_space<vmem>>, vector<1x32x36xbf16>
    %76 = vector.shape_cast %75 : vector<1x32x36xbf16> to vector<32x36xbf16>
    %c15_91 = arith.constant 15 : index
    %c0_92 = arith.constant 0 : index
    %c0_93 = arith.constant 0 : index
    %77 = vector.load %arg1[%c15_91, %c0_92, %c0_93] : memref<32x36x4xbf16, #tpu.memory_space<vmem>>, vector<1x36x4xbf16>
    %78 = vector.shape_cast %77 : vector<1x36x4xbf16> to vector<36x4xbf16>
    %cst_94 = arith.constant dense<0.000000e+00> : vector<32x4xf32>
    %79 = tpu.matmul %76, %78, %cst_94 {dimension_numbers = #tpu.dot_dimension_numbers<[1], [0], [0], [1], [0, 0, 1, 1], [], []>} : vector<32x36xbf16>, vector<36x4xbf16>, vector<32x4xf32> -> vector<32x4xf32>
    %c16 = arith.constant 16 : index
    %c0_95 = arith.constant 0 : index
    %c0_96 = arith.constant 0 : index
    %80 = vector.load %arg0[%c16, %c0_95, %c0_96] : memref<32x32x36xbf16, #tpu.memory_space<vmem>>, vector<1x32x36xbf16>
    %81 = vector.shape_cast %80 : vector<1x32x36xbf16> to vector<32x36xbf16>
    %c16_97 = arith.constant 16 : index
    %c0_98 = arith.constant 0 : index
    %c0_99 = arith.constant 0 : index
    %82 = vector.load %arg1[%c16_97, %c0_98, %c0_99] : memref<32x36x4xbf16, #tpu.memory_space<vmem>>, vector<1x36x4xbf16>
    %83 = vector.shape_cast %82 : vector<1x36x4xbf16> to vector<36x4xbf16>
    %cst_100 = arith.constant dense<0.000000e+00> : vector<32x4xf32>
    %84 = tpu.matmul %81, %83, %cst_100 {dimension_numbers = #tpu.dot_dimension_numbers<[1], [0], [0], [1], [0, 0, 1, 1], [], []>} : vector<32x36xbf16>, vector<36x4xbf16>, vector<32x4xf32> -> vector<32x4xf32>
    %c17 = arith.constant 17 : index
    %c0_101 = arith.constant 0 : index
    %c0_102 = arith.constant 0 : index
    %85 = vector.load %arg0[%c17, %c0_101, %c0_102] : memref<32x32x36xbf16, #tpu.memory_space<vmem>>, vector<1x32x36xbf16>
    %86 = vector.shape_cast %85 : vector<1x32x36xbf16> to vector<32x36xbf16>
    %c17_103 = arith.constant 17 : index
    %c0_104 = arith.constant 0 : index
    %c0_105 = arith.constant 0 : index
    %87 = vector.load %arg1[%c17_103, %c0_104, %c0_105] : memref<32x36x4xbf16, #tpu.memory_space<vmem>>, vector<1x36x4xbf16>
    %88 = vector.shape_cast %87 : vector<1x36x4xbf16> to vector<36x4xbf16>
    %cst_106 = arith.constant dense<0.000000e+00> : vector<32x4xf32>
    %89 = tpu.matmul %86, %88, %cst_106 {dimension_numbers = #tpu.dot_dimension_numbers<[1], [0], [0], [1], [0, 0, 1, 1], [], []>} : vector<32x36xbf16>, vector<36x4xbf16>, vector<32x4xf32> -> vector<32x4xf32>
    %c18 = arith.constant 18 : index
    %c0_107 = arith.constant 0 : index
    %c0_108 = arith.constant 0 : index
    %90 = vector.load %arg0[%c18, %c0_107, %c0_108] : memref<32x32x36xbf16, #tpu.memory_space<vmem>>, vector<1x32x36xbf16>
    %91 = vector.shape_cast %90 : vector<1x32x36xbf16> to vector<32x36xbf16>
    %c18_109 = arith.constant 18 : index
    %c0_110 = arith.constant 0 : index
    %c0_111 = arith.constant 0 : index
    %92 = vector.load %arg1[%c18_109, %c0_110, %c0_111] : memref<32x36x4xbf16, #tpu.memory_space<vmem>>, vector<1x36x4xbf16>
    %93 = vector.shape_cast %92 : vector<1x36x4xbf16> to vector<36x4xbf16>
    %cst_112 = arith.constant dense<0.000000e+00> : vector<32x4xf32>
    %94 = tpu.matmul %91, %93, %cst_112 {dimension_numbers = #tpu.dot_dimension_numbers<[1], [0], [0], [1], [0, 0, 1, 1], [], []>} : vector<32x36xbf16>, vector<36x4xbf16>, vector<32x4xf32> -> vector<32x4xf32>
    %c19 = arith.constant 19 : index
    %c0_113 = arith.constant 0 : index
    %c0_114 = arith.constant 0 : index
    %95 = vector.load %arg0[%c19, %c0_113, %c0_114] : memref<32x32x36xbf16, #tpu.memory_space<vmem>>, vector<1x32x36xbf16>
    %96 = vector.shape_cast %95 : vector<1x32x36xbf16> to vector<32x36xbf16>
    %c19_115 = arith.constant 19 : index
    %c0_116 = arith.constant 0 : index
    %c0_117 = arith.constant 0 : index
    %97 = vector.load %arg1[%c19_115, %c0_116, %c0_117] : memref<32x36x4xbf16, #tpu.memory_space<vmem>>, vector<1x36x4xbf16>
    %98 = vector.shape_cast %97 : vector<1x36x4xbf16> to vector<36x4xbf16>
    %cst_118 = arith.constant dense<0.000000e+00> : vector<32x4xf32>
    %99 = tpu.matmul %96, %98, %cst_118 {dimension_numbers = #tpu.dot_dimension_numbers<[1], [0], [0], [1], [0, 0, 1, 1], [], []>} : vector<32x36xbf16>, vector<36x4xbf16>, vector<32x4xf32> -> vector<32x4xf32>
    %c20 = arith.constant 20 : index
    %c0_119 = arith.constant 0 : index
    %c0_120 = arith.constant 0 : index
    %100 = vector.load %arg0[%c20, %c0_119, %c0_120] : memref<32x32x36xbf16, #tpu.memory_space<vmem>>, vector<1x32x36xbf16>
    %101 = vector.shape_cast %100 : vector<1x32x36xbf16> to vector<32x36xbf16>
    %c20_121 = arith.constant 20 : index
    %c0_122 = arith.constant 0 : index
    %c0_123 = arith.constant 0 : index
    %102 = vector.load %arg1[%c20_121, %c0_122, %c0_123] : memref<32x36x4xbf16, #tpu.memory_space<vmem>>, vector<1x36x4xbf16>
    %103 = vector.shape_cast %102 : vector<1x36x4xbf16> to vector<36x4xbf16>
    %cst_124 = arith.constant dense<0.000000e+00> : vector<32x4xf32>
    %104 = tpu.matmul %101, %103, %cst_124 {dimension_numbers = #tpu.dot_dimension_numbers<[1], [0], [0], [1], [0, 0, 1, 1], [], []>} : vector<32x36xbf16>, vector<36x4xbf16>, vector<32x4xf32> -> vector<32x4xf32>
    %c21 = arith.constant 21 : index
    %c0_125 = arith.constant 0 : index
    %c0_126 = arith.constant 0 : index
    %105 = vector.load %arg0[%c21, %c0_125, %c0_126] : memref<32x32x36xbf16, #tpu.memory_space<vmem>>, vector<1x32x36xbf16>
    %106 = vector.shape_cast %105 : vector<1x32x36xbf16> to vector<32x36xbf16>
    %c21_127 = arith.constant 21 : index
    %c0_128 = arith.constant 0 : index
    %c0_129 = arith.constant 0 : index
    %107 = vector.load %arg1[%c21_127, %c0_128, %c0_129] : memref<32x36x4xbf16, #tpu.memory_space<vmem>>, vector<1x36x4xbf16>
    %108 = vector.shape_cast %107 : vector<1x36x4xbf16> to vector<36x4xbf16>
    %cst_130 = arith.constant dense<0.000000e+00> : vector<32x4xf32>
    %109 = tpu.matmul %106, %108, %cst_130 {dimension_numbers = #tpu.dot_dimension_numbers<[1], [0], [0], [1], [0, 0, 1, 1], [], []>} : vector<32x36xbf16>, vector<36x4xbf16>, vector<32x4xf32> -> vector<32x4xf32>
    %c22 = arith.constant 22 : index
    %c0_131 = arith.constant 0 : index
    %c0_132 = arith.constant 0 : index
    %110 = vector.load %arg0[%c22, %c0_131, %c0_132] : memref<32x32x36xbf16, #tpu.memory_space<vmem>>, vector<1x32x36xbf16>
    %111 = vector.shape_cast %110 : vector<1x32x36xbf16> to vector<32x36xbf16>
    %c22_133 = arith.constant 22 : index
    %c0_134 = arith.constant 0 : index
    %c0_135 = arith.constant 0 : index
    %112 = vector.load %arg1[%c22_133, %c0_134, %c0_135] : memref<32x36x4xbf16, #tpu.memory_space<vmem>>, vector<1x36x4xbf16>
    %113 = vector.shape_cast %112 : vector<1x36x4xbf16> to vector<36x4xbf16>
    %cst_136 = arith.constant dense<0.000000e+00> : vector<32x4xf32>
    %114 = tpu.matmul %111, %113, %cst_136 {dimension_numbers = #tpu.dot_dimension_numbers<[1], [0], [0], [1], [0, 0, 1, 1], [], []>} : vector<32x36xbf16>, vector<36x4xbf16>, vector<32x4xf32> -> vector<32x4xf32>
    %c23 = arith.constant 23 : index
    %c0_137 = arith.constant 0 : index
    %c0_138 = arith.constant 0 : index
    %115 = vector.load %arg0[%c23, %c0_137, %c0_138] : memref<32x32x36xbf16, #tpu.memory_space<vmem>>, vector<1x32x36xbf16>
    %116 = vector.shape_cast %115 : vector<1x32x36xbf16> to vector<32x36xbf16>
    %c23_139 = arith.constant 23 : index
    %c0_140 = arith.constant 0 : index
    %c0_141 = arith.constant 0 : index
    %117 = vector.load %arg1[%c23_139, %c0_140, %c0_141] : memref<32x36x4xbf16, #tpu.memory_space<vmem>>, vector<1x36x4xbf16>
    %118 = vector.shape_cast %117 : vector<1x36x4xbf16> to vector<36x4xbf16>
    %cst_142 = arith.constant dense<0.000000e+00> : vector<32x4xf32>
    %119 = tpu.matmul %116, %118, %cst_142 {dimension_numbers = #tpu.dot_dimension_numbers<[1], [0], [0], [1], [0, 0, 1, 1], [], []>} : vector<32x36xbf16>, vector<36x4xbf16>, vector<32x4xf32> -> vector<32x4xf32>
    %c24 = arith.constant 24 : index
    %c0_143 = arith.constant 0 : index
    %c0_144 = arith.constant 0 : index
    %120 = vector.load %arg0[%c24, %c0_143, %c0_144] : memref<32x32x36xbf16, #tpu.memory_space<vmem>>, vector<1x32x36xbf16>
    %121 = vector.shape_cast %120 : vector<1x32x36xbf16> to vector<32x36xbf16>
    %c24_145 = arith.constant 24 : index
    %c0_146 = arith.constant 0 : index
    %c0_147 = arith.constant 0 : index
    %122 = vector.load %arg1[%c24_145, %c0_146, %c0_147] : memref<32x36x4xbf16, #tpu.memory_space<vmem>>, vector<1x36x4xbf16>
    %123 = vector.shape_cast %122 : vector<1x36x4xbf16> to vector<36x4xbf16>
    %cst_148 = arith.constant dense<0.000000e+00> : vector<32x4xf32>
    %124 = tpu.matmul %121, %123, %cst_148 {dimension_numbers = #tpu.dot_dimension_numbers<[1], [0], [0], [1], [0, 0, 1, 1], [], []>} : vector<32x36xbf16>, vector<36x4xbf16>, vector<32x4xf32> -> vector<32x4xf32>
    %c25 = arith.constant 25 : index
    %c0_149 = arith.constant 0 : index
    %c0_150 = arith.constant 0 : index
    %125 = vector.load %arg0[%c25, %c0_149, %c0_150] : memref<32x32x36xbf16, #tpu.memory_space<vmem>>, vector<1x32x36xbf16>
    %126 = vector.shape_cast %125 : vector<1x32x36xbf16> to vector<32x36xbf16>
    %c25_151 = arith.constant 25 : index
    %c0_152 = arith.constant 0 : index
    %c0_153 = arith.constant 0 : index
    %127 = vector.load %arg1[%c25_151, %c0_152, %c0_153] : memref<32x36x4xbf16, #tpu.memory_space<vmem>>, vector<1x36x4xbf16>
    %128 = vector.shape_cast %127 : vector<1x36x4xbf16> to vector<36x4xbf16>
    %cst_154 = arith.constant dense<0.000000e+00> : vector<32x4xf32>
    %129 = tpu.matmul %126, %128, %cst_154 {dimension_numbers = #tpu.dot_dimension_numbers<[1], [0], [0], [1], [0, 0, 1, 1], [], []>} : vector<32x36xbf16>, vector<36x4xbf16>, vector<32x4xf32> -> vector<32x4xf32>
    %c26 = arith.constant 26 : index
    %c0_155 = arith.constant 0 : index
    %c0_156 = arith.constant 0 : index
    %130 = vector.load %arg0[%c26, %c0_155, %c0_156] : memref<32x32x36xbf16, #tpu.memory_space<vmem>>, vector<1x32x36xbf16>
    %131 = vector.shape_cast %130 : vector<1x32x36xbf16> to vector<32x36xbf16>
    %c26_157 = arith.constant 26 : index
    %c0_158 = arith.constant 0 : index
    %c0_159 = arith.constant 0 : index
    %132 = vector.load %arg1[%c26_157, %c0_158, %c0_159] : memref<32x36x4xbf16, #tpu.memory_space<vmem>>, vector<1x36x4xbf16>
    %133 = vector.shape_cast %132 : vector<1x36x4xbf16> to vector<36x4xbf16>
    %cst_160 = arith.constant dense<0.000000e+00> : vector<32x4xf32>
    %134 = tpu.matmul %131, %133, %cst_160 {dimension_numbers = #tpu.dot_dimension_numbers<[1], [0], [0], [1], [0, 0, 1, 1], [], []>} : vector<32x36xbf16>, vector<36x4xbf16>, vector<32x4xf32> -> vector<32x4xf32>
    %c27 = arith.constant 27 : index
    %c0_161 = arith.constant 0 : index
    %c0_162 = arith.constant 0 : index
    %135 = vector.load %arg0[%c27, %c0_161, %c0_162] : memref<32x32x36xbf16, #tpu.memory_space<vmem>>, vector<1x32x36xbf16>
    %136 = vector.shape_cast %135 : vector<1x32x36xbf16> to vector<32x36xbf16>
    %c27_163 = arith.constant 27 : index
    %c0_164 = arith.constant 0 : index
    %c0_165 = arith.constant 0 : index
    %137 = vector.load %arg1[%c27_163, %c0_164, %c0_165] : memref<32x36x4xbf16, #tpu.memory_space<vmem>>, vector<1x36x4xbf16>
    %138 = vector.shape_cast %137 : vector<1x36x4xbf16> to vector<36x4xbf16>
    %cst_166 = arith.constant dense<0.000000e+00> : vector<32x4xf32>
    %139 = tpu.matmul %136, %138, %cst_166 {dimension_numbers = #tpu.dot_dimension_numbers<[1], [0], [0], [1], [0, 0, 1, 1], [], []>} : vector<32x36xbf16>, vector<36x4xbf16>, vector<32x4xf32> -> vector<32x4xf32>
    %c28 = arith.constant 28 : index
    %c0_167 = arith.constant 0 : index
    %c0_168 = arith.constant 0 : index
    %140 = vector.load %arg0[%c28, %c0_167, %c0_168] : memref<32x32x36xbf16, #tpu.memory_space<vmem>>, vector<1x32x36xbf16>
    %141 = vector.shape_cast %140 : vector<1x32x36xbf16> to vector<32x36xbf16>
    %c28_169 = arith.constant 28 : index
    %c0_170 = arith.constant 0 : index
    %c0_171 = arith.constant 0 : index
    %142 = vector.load %arg1[%c28_169, %c0_170, %c0_171] : memref<32x36x4xbf16, #tpu.memory_space<vmem>>, vector<1x36x4xbf16>
    %143 = vector.shape_cast %142 : vector<1x36x4xbf16> to vector<36x4xbf16>
    %cst_172 = arith.constant dense<0.000000e+00> : vector<32x4xf32>
    %144 = tpu.matmul %141, %143, %cst_172 {dimension_numbers = #tpu.dot_dimension_numbers<[1], [0], [0], [1], [0, 0, 1, 1], [], []>} : vector<32x36xbf16>, vector<36x4xbf16>, vector<32x4xf32> -> vector<32x4xf32>
    %c29 = arith.constant 29 : index
    %c0_173 = arith.constant 0 : index
    %c0_174 = arith.constant 0 : index
    %145 = vector.load %arg0[%c29, %c0_173, %c0_174] : memref<32x32x36xbf16, #tpu.memory_space<vmem>>, vector<1x32x36xbf16>
    %146 = vector.shape_cast %145 : vector<1x32x36xbf16> to vector<32x36xbf16>
    %c29_175 = arith.constant 29 : index
    %c0_176 = arith.constant 0 : index
    %c0_177 = arith.constant 0 : index
    %147 = vector.load %arg1[%c29_175, %c0_176, %c0_177] : memref<32x36x4xbf16, #tpu.memory_space<vmem>>, vector<1x36x4xbf16>
    %148 = vector.shape_cast %147 : vector<1x36x4xbf16> to vector<36x4xbf16>
    %cst_178 = arith.constant dense<0.000000e+00> : vector<32x4xf32>
    %149 = tpu.matmul %146, %148, %cst_178 {dimension_numbers = #tpu.dot_dimension_numbers<[1], [0], [0], [1], [0, 0, 1, 1], [], []>} : vector<32x36xbf16>, vector<36x4xbf16>, vector<32x4xf32> -> vector<32x4xf32>
    %c30 = arith.constant 30 : index
    %c0_179 = arith.constant 0 : index
    %c0_180 = arith.constant 0 : index
    %150 = vector.load %arg0[%c30, %c0_179, %c0_180] : memref<32x32x36xbf16, #tpu.memory_space<vmem>>, vector<1x32x36xbf16>
    %151 = vector.shape_cast %150 : vector<1x32x36xbf16> to vector<32x36xbf16>
    %c30_181 = arith.constant 30 : index
    %c0_182 = arith.constant 0 : index
    %c0_183 = arith.constant 0 : index
    %152 = vector.load %arg1[%c30_181, %c0_182, %c0_183] : memref<32x36x4xbf16, #tpu.memory_space<vmem>>, vector<1x36x4xbf16>
    %153 = vector.shape_cast %152 : vector<1x36x4xbf16> to vector<36x4xbf16>
    %cst_184 = arith.constant dense<0.000000e+00> : vector<32x4xf32>
    %154 = tpu.matmul %151, %153, %cst_184 {dimension_numbers = #tpu.dot_dimension_numbers<[1], [0], [0], [1], [0, 0, 1, 1], [], []>} : vector<32x36xbf16>, vector<36x4xbf16>, vector<32x4xf32> -> vector<32x4xf32>
    %c31 = arith.constant 31 : index
    %c0_185 = arith.constant 0 : index
    %c0_186 = arith.constant 0 : index
    %155 = vector.load %arg0[%c31, %c0_185, %c0_186] : memref<32x32x36xbf16, #tpu.memory_space<vmem>>, vector<1x32x36xbf16>
    %156 = vector.shape_cast %155 : vector<1x32x36xbf16> to vector<32x36xbf16>
    %c31_187 = arith.constant 31 : index
    %c0_188 = arith.constant 0 : index
    %c0_189 = arith.constant 0 : index
    %157 = vector.load %arg1[%c31_187, %c0_188, %c0_189] : memref<32x36x4xbf16, #tpu.memory_space<vmem>>, vector<1x36x4xbf16>
    %158 = vector.shape_cast %157 : vector<1x36x4xbf16> to vector<36x4xbf16>
    %cst_190 = arith.constant dense<0.000000e+00> : vector<32x4xf32>
    %159 = tpu.matmul %156, %158, %cst_190 {dimension_numbers = #tpu.dot_dimension_numbers<[1], [0], [0], [1], [0, 0, 1, 1], [], []>} : vector<32x36xbf16>, vector<36x4xbf16>, vector<32x4xf32> -> vector<32x4xf32>
    %160 = tpu.concatenate %4, %9, %14, %19, %24, %29, %34, %39, %44, %49, %54, %59, %64, %69, %74, %79 in 1 : vector<32x4xf32>, vector<32x4xf32>, vector<32x4xf32>, vector<32x4xf32>, vector<32x4xf32>, vector<32x4xf32>, vector<32x4xf32>, vector<32x4xf32>, vector<32x4xf32>, vector<32x4xf32>, vector<32x4xf32>, vector<32x4xf32>, vector<32x4xf32>, vector<32x4xf32>, vector<32x4xf32>, vector<32x4xf32> -> vector<32x64xf32>
    %161 = tpu.concatenate %84, %89, %94, %99, %104, %109, %114, %119, %124, %129, %134, %139, %144, %149, %154, %159 in 1 : vector<32x4xf32>, vector<32x4xf32>, vector<32x4xf32>, vector<32x4xf32>, vector<32x4xf32>, vector<32x4xf32>, vector<32x4xf32>, vector<32x4xf32>, vector<32x4xf32>, vector<32x4xf32>, vector<32x4xf32>, vector<32x4xf32>, vector<32x4xf32>, vector<32x4xf32>, vector<32x4xf32>, vector<32x4xf32> -> vector<32x64xf32>
    %162 = tpu.concatenate %160, %161 in 1 : vector<32x64xf32>, vector<32x64xf32> -> vector<32x128xf32>
    %cst_191 = arith.constant dense<0.000000e+00> : vector<128xf32>
    %163 = vector.multi_reduction <add>, %162, %cst_191 [0] : vector<32x128xf32> to vector<128xf32>
    %164 = vector.shape_cast %163 : vector<128xf32> to vector<1x128xf32>
    %165 = arith.mulf %162, %162 : vector<32x128xf32>
    %cst_192 = arith.constant dense<0.000000e+00> : vector<128xf32>
    %166 = vector.multi_reduction <add>, %165, %cst_192 [0] : vector<32x128xf32> to vector<128xf32>
    %167 = vector.shape_cast %166 : vector<128xf32> to vector<1x128xf32>
    %cst_193 = arith.constant 3.200000e+01 : f32
    %168 = vector.broadcast %cst_193 : f32 to vector<1x128xf32>
    %169 = arith.divf %164, %168 : vector<1x128xf32>
    %cst_194 = arith.constant 3.200000e+01 : f32
    %170 = vector.broadcast %cst_194 : f32 to vector<1x128xf32>
    %171 = arith.divf %167, %170 : vector<1x128xf32>
    %172 = arith.mulf %169, %169 : vector<1x128xf32>
    %173 = arith.subf %171, %172 : vector<1x128xf32>
    %c0_195 = arith.constant 0 : index
    %c0_196 = arith.constant 0 : index
    %174 = vector.load %arg2[%c0_195, %c0_196] : memref<1x128xf32, #tpu.memory_space<vmem>>, vector<1x128xf32>
    %cst_197 = arith.constant 9.99999974E-6 : f32
    %175 = vector.broadcast %cst_197 : f32 to vector<1x128xf32>
    %176 = arith.addf %173, %175 : vector<1x128xf32>
    %177 = math.rsqrt %176 : vector<1x128xf32>
    %178 = arith.mulf %174, %177 : vector<1x128xf32>
    %c0_198 = arith.constant 0 : index
    %c0_199 = arith.constant 0 : index
    %179 = vector.load %arg3[%c0_198, %c0_199] : memref<1x128xf32, #tpu.memory_space<vmem>>, vector<1x128xf32>
    %180 = arith.mulf %169, %178 : vector<1x128xf32>
    %181 = arith.subf %179, %180 : vector<1x128xf32>
    %182 = vector.broadcast %178 : vector<1x128xf32> to vector<32x128xf32>
    %183 = arith.mulf %162, %182 : vector<32x128xf32>
    %184 = vector.broadcast %181 : vector<1x128xf32> to vector<32x128xf32>
    %185 = arith.addf %183, %184 : vector<32x128xf32>
    %cst_200 = arith.constant 0.000000e+00 : f32
    %186 = vector.broadcast %cst_200 : f32 to vector<32x128xf32>
    %187 = arith.maximumf %185, %186 : vector<32x128xf32>
    %188 = arith.truncf %187 : vector<32x128xf32> to vector<32x128xbf16>
    %c0_201 = arith.constant 0 : index
    %c0_202 = arith.constant 0 : index
    %189 = vector.load %arg4[%c0_201, %c0_202] : memref<32x128xbf16, #tpu.memory_space<vmem>>, vector<32x128xbf16>
    tpu.vector_store %arg4[%c0_201, %c0_202], %188 {strides = array<i32>} : memref<32x128xbf16, #tpu.memory_space<vmem>>, vector<32x128xbf16>,
    return
  }
}

module attributes {stable_mosaic.version = 11 : i64} {
  func.func @matmul_cout_kernel(%arg0: i32, %arg1: memref<32x128xbf16, #tpu.memory_space<vmem>>, %arg2: memref<128x128xbf16, #tpu.memory_space<vmem>>, %arg3: memref<32x128xf32, #tpu.memory_space<vmem>>) attributes {dimension_semantics = [#tpu.dimension_semantics<parallel>], iteration_bounds = array<i64: 1>, scalar_prefetch = 0 : i64, scratch_operands = 0 : i64, tpu.core_type = #tpu.core_type<tc>, window_params = [{pipeline_mode = #tpu.pipeline_mode<synchronous>, transform_indices = @transform_0, window_bounds = array<i64: 32, 128>}, {transform_indices = @transform_1, window_bounds = array<i64: 128, 128>}, {transform_indices = @transform_2, window_bounds = array<i64: 32, 128>}]} {
    %c0 = arith.constant 0 : index
    %c0_0 = arith.constant 0 : index
    %0 = vector.load %arg1[%c0, %c0_0] : memref<32x128xbf16, #tpu.memory_space<vmem>>, vector<32x128xbf16>
    %c0_1 = arith.constant 0 : index
    %c0_2 = arith.constant 0 : index
    %1 = vector.load %arg2[%c0_1, %c0_2] : memref<128x128xbf16, #tpu.memory_space<vmem>>, vector<128x128xbf16>
    %cst = arith.constant dense<0.000000e+00> : vector<32x128xf32>
    %2 = tpu.matmul %0, %1, %cst {dimension_numbers = #tpu.dot_dimension_numbers<[1], [0], [0], [1], [0, 0, 1, 1], [], []>} : vector<32x128xbf16>, vector<128x128xbf16>, vector<32x128xf32> -> vector<32x128xf32>
    %c0_3 = arith.constant 0 : index
    %c0_4 = arith.constant 0 : index
    %3 = vector.load %arg3[%c0_3, %c0_4] : memref<32x128xf32, #tpu.memory_space<vmem>>, vector<32x128xf32>
    tpu.vector_store %arg3[%c0_3, %c0_4], %2 {strides = array<i32>} : memref<32x128xf32, #tpu.memory_space<vmem>>, vector<32x128xf32>,
    return
  }
  func.func @transform_0(%arg0: i32) -> (i32, i32) {
    %c0_i32 = arith.constant 0 : i32
    %c0_i32_0 = arith.constant 0 : i32
    %c0_i32_1 = arith.constant 0 : i32
    return %c0_i32, %c0_i32_0 : i32, i32
  }
  func.func @transform_1(%arg0: i32) -> (i32, i32) {
    %c0_i32 = arith.constant 0 : i32
    %c0_i32_0 = arith.constant 0 : i32
    return %c0_i32, %arg0 : i32, i32
  }
  func.func @transform_2(%arg0: i32) -> (i32, i32) {
    %c0_i32 = arith.constant 0 : i32
    %c0_i32_0 = arith.constant 0 : i32
    return %c0_i32, %arg0 : i32, i32
  }
}

</mosaic_0001>

<bundles_post_ra>
// kernel: forward.3
= control target key start
LH: loop header
LB: loop body
LE: loop exit
PB: predicated region body
PF: predicated region fallthrough
CT: control target
= control target key end

     0   :  { %8 = vsyncpa [#allocation3], 0  ;;  %s303_s15 = smov [#allocation2]   ;;  %s304_s17 = smov 128   ;;  %s456_s0 = inlined_call_operand.hbm [shape: f32[128,128], index: 0, kind: input, shape index: {}]   ;;  %s457_s1 = inlined_call_operand.vmem [shape: f32[1,128], index: 1, kind: input, shape index: {}]   ;;  %s458_s2 = inlined_call_operand.vmem [shape: f32[1,128], index: 2, kind: input, shape index: {}]   ;;  %s459_s3 = inlined_call_operand.vmem [shape: bf16[128,128], index: 3, kind: output, shape index: {}]  }
   0x1   :  { %s13_s14 = sshll.u32 %s456_s0, 4  ;;  %s15_s16 = sshll.u32 %s303_s15, 4  ;;  %s14_s14 = int_to_ptr.hbm [resolvable:$true] %s13_s14  ;;  %s16_s16 = int_to_ptr.vmem [resolvable:$true] %s15_s16 }
   0x2   :  { %s305_s18 = smov 8  }
   0x3   :  { %21 = dma.hbm_to_vmem [thread:$0]  %s14_s14, 2048, %s16_s16, [#allocation3], %s304_s17, %s304_s17, %s305_s18  }
   0x4   :  { %301 = dma.done.wait [#allocation3], 2048  }
   0x5   :  { %302 = vsyncadd [#allocation3], 4294965248  ;;  %v330_v0 = vld [vmem:[#allocation2] sm:$0xff]  ;;  %v332_v1 = vld [vmem:[#allocation2 + $0x8] sm:$0xff]  ;;  %v306_v34 = vmov 128.0  }
   0x6   :  { %v334_v2 = vld [vmem:[#allocation2 + $0x10] sm:$0xff]  ;;  %v336_v3 = vld [vmem:[#allocation2 + $0x18] sm:$0xff]  ;;  %v46_v4 = vadd.f32 %v332_v1, %v330_v0  ;;  %v67_v5 = vmul.f32 %v330_v0, %v330_v0  ;;  %v68_v6 = vmul.f32 %v332_v1, %v332_v1  ;;  %v346_v8 = vld [vmem:[#allocation2 + $0x20] sm:$0xff]  ;;  %273 = vrcp.f32 %v306_v34 }
   0x7   :  { %v69_v7 = vmul.f32 %v334_v2, %v334_v2  ;;  %v70_v10 = vmul.f32 %v336_v3, %v336_v3  ;;  %v351_v12 = vld [vmem:[#allocation2 + $0x28] sm:$0xff]  ;;  %v71_v14 = vmul.f32 %v346_v8, %v346_v8  ;;  %v356_v16 = vld [vmem:[#allocation2 + $0x30] sm:$0xff]  ;;  %v361_v20 = vld [vmem:[#allocation2 + $0x38] sm:$0xff] }
   0x8   :  { %v47_v9 = vadd.f32 %v46_v4, %v334_v2  ;;  %v83_v11 = vadd.f32 %v68_v6, %v67_v5  ;;  %v72_v18 = vmul.f32 %v351_v12, %v351_v12  ;;  %v73_v22 = vmul.f32 %v356_v16, %v356_v16  ;;  %v366_v24 = vld [vmem:[#allocation2 + $0x40] sm:$0xff]  ;;  %v371_v28 = vld [vmem:[#allocation2 + $0x48] sm:$0xff]  ;;  %v376_v32 = vld [vmem:[#allocation2 + $0x50] sm:$0xff] }
   0x9   :  { %v74_v26 = vmul.f32 %v361_v20, %v361_v20  ;;  %v75_v30 = vmul.f32 %v366_v24, %v366_v24  ;;  %v76_v35 = vmul.f32 %v371_v28, %v371_v28  ;;  %v381_v37 = vld [vmem:[#allocation2 + $0x58] sm:$0xff]  ;;  %v77_v39 = vmul.f32 %v376_v32, %v376_v32  ;;  %v386_v41 = vld [vmem:[#allocation2 + $0x60] sm:$0xff]  ;;  %v391_v46 = vld [vmem:[#allocation2 + $0x68] sm:$0xff] }
   0xa   :  { %v48_v13 = vadd.f32 %v47_v9, %v336_v3  ;;  %v84_v15 = vadd.f32 %v83_v11, %v69_v7  ;;  %v78_v43 = vmul.f32 %v381_v37, %v381_v37  ;;  %v79_v48 = vmul.f32 %v386_v41, %v386_v41  ;;  %v396_v50 = vld [vmem:[#allocation2 + $0x70] sm:$0xff]  ;;  %v401_v55 = vld [vmem:[#allocation2 + $0x78] sm:$0xff] }
   0xb   :  { %v80_v52 = vmul.f32 %v391_v46, %v391_v46  ;;  %v81_v57 = vmul.f32 %v396_v50, %v396_v50  ;;  %v82_v60 = vmul.f32 %v401_v55, %v401_v55 }
   0xc   :  { %v49_v17 = vadd.f32 %v48_v13, %v346_v8  ;;  %v85_v19 = vadd.f32 %v84_v15, %v70_v10  ;;  %v274_v45 = vpop.eup %273 }
   0xd   :  { %v105_v54 = vmul.f32 128.0, %v274_v45  ;;  %vm109_vm0 = vweird.f32 %v274_v45 }
   0xe   :  { %v50_v21 = vadd.f32 %v49_v17, %v351_v12  ;;  %v86_v23 = vadd.f32 %v85_v19, %v71_v14 }
   0xf   :  { %v106_v62 = vsub.f32 1.0, %v105_v54 }
  0x10   :  { %v51_v25 = vadd.f32 %v50_v21, %v356_v16  ;;  %v87_v27 = vadd.f32 %v86_v23, %v72_v18 }
  0x11   :  { %v107_v7 = vmul.f32 %v274_v45, %v106_v62 }
  0x12   :  { %v52_v29 = vadd.f32 %v51_v25, %v361_v20  ;;  %v88_v31 = vadd.f32 %v87_v27, %v73_v22 }
  0x13   :  { %v108_v14 = vadd.f32 %v274_v45, %v107_v7 }
  0x14   :  { %v53_v33 = vadd.f32 %v52_v29, %v366_v24  ;;  %v89_v36 = vadd.f32 %v88_v31, %v74_v26 }
  0x15   :  { %v110_v21 = vsel %vm109_vm0, %v274_v45, %v108_v14 }
  0x16   :  { %v54_v38 = vadd.f32 %v53_v33, %v371_v28  ;;  %v90_v40 = vadd.f32 %v89_v36, %v75_v30 }
  0x18   :  { %v55_v42 = vadd.f32 %v54_v38, %v376_v32  ;;  %v91_v44 = vadd.f32 %v90_v40, %v76_v35 }
  0x1a   :  { %v56_v47 = vadd.f32 %v55_v42, %v381_v37  ;;  %v92_v49 = vadd.f32 %v91_v44, %v77_v39  ;;  %v115_v39 = vld [vmem:[%s457_s1] sm:$0x1] }
  0x1b   :  { %v128_v44 = vld [vmem:[%s458_s2] sm:$0x1] }
  0x1c   :  { %v57_v51 = vadd.f32 %v56_v47, %v386_v41  ;;  %v93_v53 = vadd.f32 %v92_v49, %v78_v43 }
  0x1e   :  { %v58_v56 = vadd.f32 %v57_v51, %v391_v46  ;;  %v94_v58 = vadd.f32 %v93_v53, %v79_v48 }
  0x20   :  { %v59_v59 = vadd.f32 %v58_v56, %v396_v50  ;;  %v95_v61 = vadd.f32 %v94_v58, %v80_v52 }
  0x22   :  { %v60_v63 = vadd.f32 %v59_v59, %v401_v55  ;;  %v96_v4 = vadd.f32 %v95_v61, %v81_v57 }
  0x24   :  { %v61_v5 = vrot.slane %v60_v63, 4  ;;  %v97_v6 = vadd.f32 %v96_v4, %v82_v60 }
  0x26   :  { %v62_v9 = vadd.f32 %v61_v5, %v60_v63  ;;  %v98_v10 = vrot.slane %v97_v6, 4 }
  0x28   :  { %v63_v11 = vrot.slane %v62_v9, 2  ;;  %v99_v13 = vadd.f32 %v98_v10, %v97_v6 }
  0x2a   :  { %v64_v15 = vadd.f32 %v63_v11, %v62_v9  ;;  %v100_v17 = vrot.slane %v99_v13, 2 }
  0x2c   :  { %v65_v18 = vrot.slane %v64_v15, 1  ;;  %v101_v19 = vadd.f32 %v100_v17, %v99_v13 }
  0x2e   :  { %v66_v22 = vadd.f32 %v65_v18, %v64_v15  ;;  %v102_v23 = vrot.slane %v101_v19, 1 }
  0x30   :  { %v111_v25 = vmul.f32 %v110_v21, %v66_v22  ;;  %v103_v26 = vadd.f32 %v102_v23, %v101_v19 }
  0x32   :  { %v113_v27 = vmul.f32 %v111_v25, %v111_v25  ;;  %v112_v29 = vmul.f32 %v110_v21, %v103_v26 }
  0x34   :  { %v114_v30 = vsub.f32 %v112_v29, %v113_v27 }
  0x36   :  { %v116_v31 = vadd.f32 1e-05, %v114_v30 }
  0x38   :  { %275 = vrsqrt.f32 %v116_v31  ;;  %vm123_vm1 = vweird.f32 %v116_v31 }
  0x3e   :  { %v276_v33 = vpop.eup %275 }
  0x3f   :  { %v118_v34 = vmul.f32 %v276_v33, %v116_v31  ;;  %vm124_vm2 = vweird.f32 %v276_v33 }
  0x40   :  { %vm125_vm3 = vmor %vm123_vm1, %vm124_vm2 }
  0x41   :  { %v119_v35 = vmul.f32 %v276_v33, %v118_v34 }
  0x43   :  { %v120_v36 = vmul.f32 0.5, %v119_v35 }
  0x45   :  { %v121_v38 = vsub.f32 1.5, %v120_v36 }
  0x47   :  { %v122_v40 = vmul.f32 %v276_v33, %v121_v38 }
  0x49   :  { %v126_v42 = vsel %vm125_vm3, %v276_v33, %v122_v40 }
  0x4a   :  { %v127_v43 = vmul.f32 %v126_v42, %v115_v39 }
  0x4c   :  { %v129_v45 = vmul.f32 %v127_v43, %v111_v25  ;;  %v132_v47 = vperm.slane %v127_v43, 0 }
  0x4e   :  { %v130_v48 = vsub.f32 %v128_v44, %v129_v45  ;;  %v134_v49 = vmul.f32 %v132_v47, %v330_v0  ;;  %v135_v51 = vmul.f32 %v132_v47, %v332_v1  ;;  %v136_v52 = vmul.f32 %v132_v47, %v334_v2 }
  0x4f   :  { %v137_v53 = vmul.f32 %v132_v47, %v336_v3  ;;  %v138_v54 = vmul.f32 %v132_v47, %v346_v8  ;;  %v139_v56 = vmul.f32 %v132_v47, %v351_v12  ;;  %v140_v57 = vmul.f32 %v132_v47, %v356_v16 }
  0x50   :  { %v151_v58 = vperm.slane %v130_v48, 0  ;;  %v141_v59 = vmul.f32 %v132_v47, %v361_v20  ;;  %v142_v60 = vmul.f32 %v132_v47, %v366_v24  ;;  %v143_v61 = vmul.f32 %v132_v47, %v371_v28 }
  0x51   :  { %v144_v0 = vmul.f32 %v132_v47, %v376_v32  ;;  %v145_v1 = vmul.f32 %v132_v47, %v381_v37  ;;  %v146_v2 = vmul.f32 %v132_v47, %v386_v41  ;;  %v147_v3 = vmul.f32 %v132_v47, %v391_v46 }
  0x52   :  { %v153_v8 = vadd.f32 %v151_v58, %v134_v49  ;;  %v154_v62 = vadd.f32 %v151_v58, %v135_v51  ;;  %v155_v12 = vadd.f32 %v151_v58, %v136_v52  ;;  %v156_v63 = vadd.f32 %v151_v58, %v137_v53 }
  0x53   :  { %v157_v16 = vadd.f32 %v151_v58, %v138_v54  ;;  %v158_v4 = vadd.f32 %v151_v58, %v139_v56  ;;  %v159_v5 = vadd.f32 %v151_v58, %v140_v57  ;;  %v160_v20 = vadd.f32 %v151_v58, %v141_v59 }
  0x54   :  { %v169_v6 = vmax.f32 %v153_v8, 0.0  ;;  %v170_v24 = vmax.f32 %v154_v62, 0.0  ;;  %v171_v7 = vmax.f32 %v155_v12, 0.0  ;;  %v172_v28 = vmax.f32 %v156_v63, 0.0 }
  0x55   :  { %v173_v9 = vmax.f32 %v157_v16, 0.0  ;;  %v174_v32 = vmax.f32 %v158_v4, 0.0  ;;  %v175_v10 = vmax.f32 %v159_v5, 0.0  ;;  %v176_v37 = vmax.f32 %v160_v20, 0.0 }
  0x56   :  { %v225_v11 = vpack.c.bf16 %v170_v24, %v169_v6  ;;  %v230_v41 = vpack.c.bf16 %v172_v28, %v171_v7  ;;  %v161_v13 = vadd.f32 %v151_v58, %v142_v60  ;;  %v162_v46 = vadd.f32 %v151_v58, %v143_v61 }
  0x57   :  { %v235_v14 = vpack.c.bf16 %v174_v32, %v173_v9  ;;  %v240_v15 = vpack.c.bf16 %v176_v37, %v175_v10  ;;  %v163_v17 = vadd.f32 %v151_v58, %v144_v0  ;;  %v164_v18 = vadd.f32 %v151_v58, %v145_v1 }
  0x58   :  { %226 = vst [vmem:[%s459_s3] sm:$0xff] %v225_v11   ;;  %v177_v19 = vmax.f32 %v161_v13, 0.0  ;;  %v178_v21 = vmax.f32 %v162_v46, 0.0  ;;  %v165_v22 = vadd.f32 %v151_v58, %v146_v2  ;;  %v166_v23 = vadd.f32 %v151_v58, %v147_v3 }
  0x59   :  { %262 = vst [vmem:[%s459_s3 + $0x8] sm:$0xff] %v230_v41   ;;  %v179_v25 = vmax.f32 %v163_v17, 0.0  ;;  %v180_v26 = vmax.f32 %v164_v18, 0.0  ;;  %v148_v27 = vmul.f32 %v132_v47, %v396_v50  ;;  %v149_v29 = vmul.f32 %v132_v47, %v401_v55 }
  0x5a   :  { %263 = vst [vmem:[%s459_s3 + $0x10] sm:$0xff] %v235_v14   ;;  %v245_v30 = vpack.c.bf16 %v178_v21, %v177_v19  ;;  %v181_v31 = vmax.f32 %v165_v22, 0.0  ;;  %v182_v33 = vmax.f32 %v166_v23, 0.0 }
  0x5b   :  { %264 = vst [vmem:[%s459_s3 + $0x18] sm:$0xff] %v240_v15   ;;  %v250_v34 = vpack.c.bf16 %v180_v26, %v179_v25  ;;  %v167_v35 = vadd.f32 %v151_v58, %v148_v27  ;;  %v168_v36 = vadd.f32 %v151_v58, %v149_v29 }
  0x5c   :  { %265 = vst [vmem:[%s459_s3 + $0x20] sm:$0xff] %v245_v30   ;;  %v255_v50 = vpack.c.bf16 %v182_v33, %v181_v31 }
  0x5d   :  { %266 = vst [vmem:[%s459_s3 + $0x28] sm:$0xff] %v250_v34   ;;  %v183_v55 = vmax.f32 %v167_v35, 0.0  ;;  %v184_v38 = vmax.f32 %v168_v36, 0.0 }
  0x5e   :  { %267 = vst [vmem:[%s459_s3 + $0x30] sm:$0xff] %v255_v50  }
  0x5f   :  { %v260_v39 = vpack.c.bf16 %v184_v38, %v183_v55 }
  0x61   :  { %268 = vst [vmem:[%s459_s3 + $0x38] sm:$0xff] %v260_v39  }
  0x62   :  { %221 = vsyncpa [#allocation3], 1 }

// kernel: forward.5
= control target key start
LH: loop header
LB: loop body
LE: loop exit
PB: predicated region body
PF: predicated region fallthrough
CT: control target
= control target key end

     0   :  { %s271_s0 = inlined_call_operand.vmem [shape: bf16[32,128], index: 0, kind: input, shape index: {}]   ;;  %s272_s1 = inlined_call_operand.vmem [shape: bf16[128,128], index: 1, kind: input, shape index: {}]   ;;  %s273_s2 = inlined_call_operand.hbm [shape: f32[32,128], index: 2, kind: output, shape index: {}]  }
   0x1   :  { %v182_v0 = vld [vmem:[%s272_s1 + $0x38] sm:$0xff]  ;;  %v181_v1 = vld [vmem:[%s272_s1 + $0x30] sm:$0xff] }
   0x2   :  { %92 = vmatpush.bf16.msra.mxu0 %v182_v0  ;;  %183 = vmatpush.bf16.msra.mxu1 %v182_v0 }
   0x3   :  { %7 = vsyncpa [#allocation3], 0  ;;  %v180_v2 = vld [vmem:[%s272_s1 + $0x28] sm:$0xff]  ;;  %v179_v3 = vld [vmem:[%s272_s1 + $0x20] sm:$0xff]  ;;  %s220_s29 = smov [#allocation2]   ;;  %s121_s4 = sshll.u32 %s273_s2, 4  ;;  %s122_s4 = int_to_ptr.hbm [resolvable:$true] %s121_s4 }
   0x4   :  { %v178_v4 = vld [vmem:[%s272_s1 + $0x18] sm:$0xff]  ;;  %v177_v5 = vld [vmem:[%s272_s1 + $0x10] sm:$0xff]  ;;  %v176_v6 = vld [vmem:[%s272_s1 + $0x8] sm:$0xff]  ;;  %s119_s30 = sshll.u32 %s220_s29, 4  ;;  %s222_s5 = smov 8   ;;  %s120_s30 = int_to_ptr.vmem [resolvable:$true] %s119_s30 }
   0x5   :  { %v175_v7 = vld [vmem:[%s272_s1] sm:$0xff]  ;;  %v174_v9 = vld [vmem:[%s271_s0 + $0x8] sm:$0xff] }
   0x6   :  { %93 = vmatpush.bf16.msra.mxu0 %v181_v1  ;;  %184 = vmatpush.bf16.msra.mxu1 %v181_v1  ;;  %v173_v8 = vld [vmem:[%s271_s0] sm:$0xff]  ;;  %s221_s0 = smov 128  }
   0xa   :  { %94 = vmatpush.bf16.msra.mxu0 %v180_v2  ;;  %185 = vmatpush.bf16.msra.mxu1 %v180_v2 }
   0xe   :  { %95 = vmatpush.bf16.msra.mxu0 %v179_v3  ;;  %186 = vmatpush.bf16.msra.mxu1 %v179_v3 }
  0x12   :  { %96 = vmatpush.bf16.msra.mxu0 %v178_v4  ;;  %187 = vmatpush.bf16.msra.mxu1 %v178_v4 }
  0x16   :  { %97 = vmatpush.bf16.msra.mxu0 %v177_v5  ;;  %188 = vmatpush.bf16.msra.mxu1 %v177_v5 }
  0x1a   :  { %98 = vmatpush.bf16.msra.mxu0 %v176_v6  ;;  %189 = vmatpush.bf16.msra.mxu1 %v176_v6 }
  0x1e   :  { %99 = vmatpush.bf16.msra.mxu0 %v175_v7  ;;  %190 = vmatpush.bf16.msra.mxu1 %v175_v7 }
  0x21   :  { %100 = vmatmul.bf16.vlgmr.msra.gmra.mxu0 %v173_v8  ;;  %105 = vmatmul.bf16.vlgmr.msra.gmra.mxu1 %v174_v9 }
  0x9e   :  { %v101_v10 = vpop.f32.mrf.mxu0  ;;  %v106_v11 = vpop.f32.mrf.mxu1 }
  0x9f   :  { %111 = vst [vmem:[#allocation2] sm:$0xff] %v101_v10 }
  0xa0   :  { %113 = vst [vmem:[#allocation2 + $0x10] sm:$0xff] %v106_v11 }
  0xa6   :  { %v103_v12 = vpop.f32.mrf.mxu0  ;;  %v108_v13 = vpop.f32.mrf.mxu1 }
  0xa7   :  { %112 = vst [vmem:[#allocation2 + $0x8] sm:$0xff] %v103_v12 }
  0xa8   :  { %114 = vst [vmem:[#allocation2 + $0x18] sm:$0xff] %v108_v13 }
  0xa9   :  { %127 = dma.vmem_to_hbm [thread:$0]  %s120_s30, 512, %s122_s4, [#allocation3], %s221_s0, %s221_s0, %s222_s5  }
  0xaa   :  { %218 = dma.done.wait [#allocation3], 512  }
  0xab   :  { %219 = vsyncadd [#allocation3], 4294966784 }
  0xac   :  { %132 = vsyncpa [#allocation3], 1 }

// kernel: forward.4
= control target key start
LH: loop header
LB: loop body
LE: loop exit
PB: predicated region body
PF: predicated region fallthrough
CT: control target
= control target key end

     0   :  { %vm59_vm0 = vcmask 1041408   ;;  %vm52_vm1 = vcmask 293888   ;;  %s3795_s21 = smov 4   ;;  %s3796_s26 = smov 8   ;;  %vm2306_vm2 = vcmask 31744   ;;  %vm2311_vm3 = vcmask 64512   ;;  %s4730_s1 = inlined_call_operand.vmem [shape: bf16[32,36,4], index: 1, kind: input, shape index: {}]   ;;  %s4731_s0 = inlined_call_operand.vmem [shape: bf16[32,32,36], index: 0, kind: input, shape index: {}]   ;;  %s4732_s2 = inlined_call_operand.vmem [shape: f32[1,128], index: 2, kind: input, shape index: {}]   ;;  %s4733_s3 = inlined_call_operand.vmem [shape: f32[1,128], index: 3, kind: input, shape index: {}]   ;;  %s4734_s4 = inlined_call_operand.vmem [shape: bf16[32,128], index: 4, kind: output, shape index: {}]  }
   0x1   :  { %v26_v0 = vld [vmem:[%s4730_s1 + $0x10] sm:$0x3]  ;;  %v2806_v1 = vld [vmem:[%s4730_s1 + $0x24] sm:$0x3]  ;;  %v2833_v2 = vld [vmem:[%s4730_s1 + $0x38] sm:$0x3] }
   0x2   :  { %v46_v3 = vunpack.c.l.b16 %v26_v0  ;;  %v112_v4 = vunpack.c.l.b16 %v2806_v1  ;;  %v176_v5 = vunpack.c.l.b16 %v2833_v2  ;;  %v2860_v6 = vld [vmem:[%s4730_s1 + $0x4c] sm:$0x3]  ;;  %v3642_v16 = vld [vmem:[%s4730_s1 + $0x1c] sm:$0xff]  ;;  %v3646_v18 = vld [vmem:[%s4730_s1 + $0x30] sm:$0xff]  ;;  %s3797_s29 = smov 12   ;;  %s3798_s7 = smov 16  }
   0x3   :  { %v240_v7 = vunpack.c.l.b16 %v2860_v6  ;;  %v3638_v15 = vld [vmem:[%s4730_s1 + $0x8] sm:$0xff]  ;;  %v2887_v20 = vld [vmem:[%s4730_s1 + $0x60] sm:$0x3]  ;;  %v2914_v22 = vld [vmem:[%s4730_s1 + $0x74] sm:$0x3]  ;;  %s3799_s16 = smov 24  }
   0x4   :  { %v49_v8 = vpack.c.b16 %v46_v3, %v46_v3  ;;  %v115_v9 = vpack.c.b16 %v112_v4, %v112_v4  ;;  %v179_v10 = vpack.c.b16 %v176_v5, %v176_v5  ;;  %v3650_v19 = vld [vmem:[%s4730_s1 + $0x44] sm:$0xff]  ;;  %v304_v21 = vunpack.c.l.b16 %v2887_v20  ;;  %v2968_v24 = vld [vmem:[%s4730_s1 + $0x9c] sm:$0x3]  ;;  %v3641_v30 = vld [vmem:[%s4730_s1 + $0x14] sm:$0xff]  ;;  %s3800_s17 = smov 28   ;;  %s3801_s23 = smov 20  }
   0x5   :  { %v243_v11 = vpack.c.b16 %v240_v7, %v240_v7  ;;  %v2941_v23 = vld [vmem:[%s4730_s1 + $0x88] sm:$0x3]  ;;  %v368_v25 = vunpack.c.l.b16 %v2914_v22  ;;  %v496_v27 = vunpack.c.l.b16 %v2968_v24  ;;  %v3637_v29 = vld [vmem:[%s4730_s1] sm:$0xff]  ;;  %v3639_v37 = vld [vmem:[%s4731_s0 + $0x10] sm:$0xff]  ;;  %s3802_s14 = smov 36   ;;  %s3803_s15 = smov 40  }
   0x6   :  { %v61_v12 = vsel %vm59_vm0, %v49_v8, 0  ;;  %v125_v13 = vsel %vm59_vm0, %v115_v9, 0  ;;  %v189_v14 = vsel %vm59_vm0, %v179_v10, 0  ;;  %v432_v26 = vunpack.c.l.b16 %v2941_v23  ;;  %v3645_v32 = vld [vmem:[%s4730_s1 + $0x28] sm:$0xff]  ;;  %v3649_v33 = vld [vmem:[%s4730_s1 + $0x3c] sm:$0xff]  ;;  %v3647_v41 = vld [vmem:[%s4731_s0 + $0x30] sm:$0xff] }
   0x7   :  { %68 = vmatpush.bf16.msra.mxu0 %v61_v12  ;;  %132 = vmatpush.bf16.msra.mxu1 %v125_v13  ;;  %v253_v17 = vsel %vm59_vm0, %v243_v11, 0  ;;  %v307_v28 = vpack.c.b16 %v304_v21, %v304_v21  ;;  %v371_v31 = vpack.c.b16 %v368_v25, %v368_v25  ;;  %v499_v35 = vpack.c.b16 %v496_v27, %v496_v27  ;;  %v3635_v36 = vld [vmem:[%s4731_s0] sm:$0xff]  ;;  %v3654_v44 = vld [vmem:[%s4730_s1 + $0x58] sm:$0xff]  ;;  %v3658_v45 = vld [vmem:[%s4730_s1 + $0x6c] sm:$0xff]  ;;  %s3804_s30 = smov 32   ;;  %s3805_s5 = smov 44  }
   0x8   :  { %196 = vmatpush.bf16.msra.mxu2 %v189_v14  ;;  %260 = vmatpush.bf16.msra.mxu3 %v253_v17  ;;  %v435_v34 = vpack.c.b16 %v432_v26, %v432_v26  ;;  %v3643_v40 = vld [vmem:[%s4731_s0 + $0x20] sm:$0xff]  ;;  %v3666_v47 = vld [vmem:[%s4730_s1 + $0x94] sm:$0xff]  ;;  %v3665_v51 = vld [vmem:[%s4730_s1 + $0x8c] sm:$0xff]  ;;  %vm2316_vm4 = vcmask 97280   ;;  %s3806_s9 = smov 48   ;;  %s3807_s10 = smov 52  }
   0x9   :  { %v317_v38 = vsel %vm59_vm0, %v307_v28, 0  ;;  %v381_v39 = vsel %vm59_vm0, %v371_v31, 0  ;;  %v509_v43 = vsel %vm59_vm0, %v499_v35, 0  ;;  %v3662_v46 = vld [vmem:[%s4730_s1 + $0x80] sm:$0xff]  ;;  %v3653_v48 = vld [vmem:[%s4730_s1 + $0x50] sm:$0xff]  ;;  %v3661_v50 = vld [vmem:[%s4730_s1 + $0x78] sm:$0xff] }
   0xa   :  { %v445_v42 = vsel %vm59_vm0, %v435_v34, 0  ;;  %v3657_v49 = vld [vmem:[%s4730_s1 + $0x64] sm:$0xff]  ;;  %v3640_v53 = vld [vmem:[%s4731_s0 + $0x18] sm:$0xff]  ;;  %v2995_v56 = vld [vmem:[%s4730_s1 + $0xb0] sm:$0x3]  ;;  %s3809_s25 = smov 56  }
   0xb   :  { %69 = vmatpush.bf16.msra.mxu0 %v3638_v15  ;;  %133 = vmatpush.bf16.msra.mxu1 %v3642_v16  ;;  %v3636_v52 = vld [vmem:[%s4731_s0 + $0x8] sm:$0xff]  ;;  %v3648_v55 = vld [vmem:[%s4731_s0 + $0x38] sm:$0xff]  ;;  %v560_v58 = vunpack.c.l.b16 %v2995_v56  ;;  %v3022_v61 = vld [vmem:[%s4730_s1 + $0xc4] sm:$0x3]  ;;  %vm2321_vm5 = vcmask 130048   ;;  %vm2326_vm6 = vcmask 162816  }
   0xc   :  { %197 = vmatpush.bf16.msra.mxu2 %v3646_v18  ;;  %261 = vmatpush.bf16.msra.mxu3 %v3650_v19  ;;  %v3644_v54 = vld [vmem:[%s4731_s0 + $0x28] sm:$0xff]  ;;  %v3049_v57 = vld [vmem:[%s4730_s1 + $0xd8] sm:$0x3]  ;;  %v624_v63 = vunpack.c.l.b16 %v3022_v61  ;;  %v3678_v9 = vld [vmem:[%s4730_s1 + $0xd0] sm:$0xff]  ;;  %vm2331_vm7 = vcmask 195584   ;;  %vm2336_vm8 = vcmask 228352  }
   0xd   :  { %v688_v59 = vunpack.c.l.b16 %v3049_v57  ;;  %v3076_v60 = vld [vmem:[%s4730_s1 + $0xec] sm:$0x3]  ;;  %v563_v0 = vpack.c.b16 %v560_v58, %v560_v58  ;;  %v3682_v10 = vld [vmem:[%s4730_s1 + $0xe4] sm:$0xff]  ;;  %v3674_v11 = vld [vmem:[%s4730_s1 + $0xbc] sm:$0xff]  ;;  %vm2341_vm9 = vcmask 261120   ;;  %vm2350_vm10 = vcmask 326656  }
   0xe   :  { %v752_v62 = vunpack.c.l.b16 %v3076_v60  ;;  %v627_v3 = vpack.c.b16 %v624_v63, %v624_v63  ;;  %v3670_v8 = vld [vmem:[%s4730_s1 + $0xa8] sm:$0xff]  ;;  %v3651_v13 = vld [vmem:[%s4731_s0 + $0x40] sm:$0xff]  ;;  %v3655_v14 = vld [vmem:[%s4731_s0 + $0x50] sm:$0xff]  ;;  %vm2355_vm11 = vcmask 359424   ;;  %vm2360_vm12 = vcmask 392192  }
   0xf   :  { %70 = vmatpush.bf16.msra.mxu0 %v3637_v29  ;;  %134 = vmatpush.bf16.msra.mxu1 %v3641_v30  ;;  %v691_v1 = vpack.c.b16 %v688_v59, %v688_v59  ;;  %v573_v4 = vsel %vm59_vm0, %v563_v0, 0  ;;  %v3677_v12 = vld [vmem:[%s4730_s1 + $0xc8] sm:$0xff]  ;;  %v3659_v15 = vld [vmem:[%s4731_s0 + $0x60] sm:$0xff]  ;;  %v3663_v16 = vld [vmem:[%s4731_s0 + $0x70] sm:$0xff]  ;;  %vm2365_vm13 = vcmask 424960   ;;  %vm2370_vm14 = vcmask 457728  }
  0x10   :  { %198 = vmatpush.bf16.msra.mxu2 %v3645_v32  ;;  %262 = vmatpush.bf16.msra.mxu3 %v3649_v33  ;;  %v755_v2 = vpack.c.b16 %v752_v62, %v752_v62  ;;  %v637_v7 = vsel %vm59_vm0, %v627_v3, 0  ;;  %v3669_v17 = vld [vmem:[%s4730_s1 + $0xa0] sm:$0xff]  ;;  %v3673_v18 = vld [vmem:[%s4730_s1 + $0xb4] sm:$0xff]  ;;  %v3652_v20 = vld [vmem:[%s4731_s0 + $0x48] sm:$0xff]  ;;  %vm2375_vm15 = vcmask 490496  }
  0x11   :  { %v701_v5 = vsel %vm59_vm0, %v691_v1, 0  ;;  %v3681_v19 = vld [vmem:[%s4730_s1 + $0xdc] sm:$0xff]  ;;  %v3660_v22 = vld [vmem:[%s4731_s0 + $0x68] sm:$0xff]  ;;  %v3130_v27 = vld [vmem:[%s4730_s1 + $0x114] sm:$0x3] }
  0x12   :  { %2796 = vmatmul.msk.bf16.vlgmr.msra.gmra.mxu0 %vm52_vm1, %v3635_v36  ;;  %2823 = vmatmul.msk.bf16.vlgmr.msra.gmra.mxu1 %vm52_vm1, %v3639_v37  ;;  %v765_v6 = vsel %vm59_vm0, %v755_v2, 0  ;;  %v3656_v21 = vld [vmem:[%s4731_s0 + $0x58] sm:$0xff]  ;;  %v3157_v24 = vld [vmem:[%s4730_s1 + $0x128] sm:$0x3]  ;;  %v3103_v26 = vld [vmem:[%s4730_s1 + $0x100] sm:$0x3]  ;;  %v880_v30 = vunpack.c.l.b16 %v3130_v27 }
  0x13   :  { %324 = vmatpush.bf16.msrb.mxu0 %v317_v38  ;;  %388 = vmatpush.bf16.msrb.mxu1 %v381_v39  ;;  %v3664_v23 = vld [vmem:[%s4731_s0 + $0x78] sm:$0xff]  ;;  %v944_v25 = vunpack.c.l.b16 %v3157_v24  ;;  %v816_v29 = vunpack.c.l.b16 %v3103_v26  ;;  %v3683_v56 = vld [vmem:[%s4731_s0 + $0xc0] sm:$0xff]  ;;  %v3687_v57 = vld [vmem:[%s4731_s0 + $0xd0] sm:$0xff] }
  0x14   :  { %2850 = vmatmul.msk.bf16.vlgmr.msra.gmra.mxu2 %vm52_vm1, %v3643_v40  ;;  %2877 = vmatmul.msk.bf16.vlgmr.msra.gmra.mxu3 %vm52_vm1, %v3647_v41  ;;  %v3184_v28 = vld [vmem:[%s4730_s1 + $0x13c] sm:$0x3]  ;;  %v883_v34 = vpack.c.b16 %v880_v30, %v880_v30  ;;  %v3694_v40 = vld [vmem:[%s4730_s1 + $0x120] sm:$0xff]  ;;  %v3695_v59 = vld [vmem:[%s4731_s0 + $0xf0] sm:$0xff] }
  0x15   :  { %452 = vmatpush.bf16.msrb.mxu2 %v445_v42  ;;  %516 = vmatpush.bf16.msrb.mxu3 %v509_v43  ;;  %v1008_v31 = vunpack.c.l.b16 %v3184_v28  ;;  %v947_v32 = vpack.c.b16 %v944_v25, %v944_v25  ;;  %v819_v33 = vpack.c.b16 %v816_v29, %v816_v29  ;;  %v3686_v41 = vld [vmem:[%s4730_s1 + $0xf8] sm:$0xff]  ;;  %v3690_v42 = vld [vmem:[%s4730_s1 + $0x10c] sm:$0xff]  ;;  %v3691_v58 = vld [vmem:[%s4731_s0 + $0xe0] sm:$0xff] }
  0x16   :  { %v893_v38 = vsel %vm59_vm0, %v883_v34, 0  ;;  %v3698_v43 = vld [vmem:[%s4730_s1 + $0x134] sm:$0xff]  ;;  %v3211_v60 = vld [vmem:[%s4730_s1 + $0x150] sm:$0x3]  ;;  %v3292_v63 = vld [vmem:[%s4730_s1 + $0x18c] sm:$0x3] }
  0x17   :  { %325 = vmatpush.bf16.msrb.mxu0 %v3654_v44  ;;  %389 = vmatpush.bf16.msrb.mxu1 %v3658_v45  ;;  %v1011_v35 = vpack.c.b16 %v1008_v31, %v1008_v31  ;;  %v957_v36 = vsel %vm59_vm0, %v947_v32, 0  ;;  %v829_v37 = vsel %vm59_vm0, %v819_v33, 0  ;;  %v3693_v44 = vld [vmem:[%s4730_s1 + $0x118] sm:$0xff]  ;;  %v3667_v45 = vld [vmem:[%s4731_s0 + $0x80] sm:$0xff]  ;;  %v1072_v61 = vunpack.c.l.b16 %v3211_v60  ;;  %v3711_v27 = vld [vmem:[%s4731_s0 + $0x130] sm:$0xff] }
  0x18   :  { %v3265_v62 = vld [vmem:[%s4730_s1 + $0x178] sm:$0x3]  ;;  %v1264_v1 = vunpack.c.l.b16 %v3292_v63  ;;  %v3707_v26 = vld [vmem:[%s4731_s0 + $0x120] sm:$0xff]  ;;  %v3703_v29 = vld [vmem:[%s4731_s0 + $0x110] sm:$0xff] }
  0x19   :  { %453 = vmatpush.bf16.msrb.mxu2 %v3662_v46  ;;  %517 = vmatpush.bf16.msrb.mxu3 %v3666_v47  ;;  %v1021_v39 = vsel %vm59_vm0, %v1011_v35, 0  ;;  %v3671_v46 = vld [vmem:[%s4731_s0 + $0x90] sm:$0xff]  ;;  %v3675_v47 = vld [vmem:[%s4731_s0 + $0xa0] sm:$0xff]  ;;  %v1200_v0 = vunpack.c.l.b16 %v3265_v62  ;;  %v1075_v2 = vpack.c.b16 %v1072_v61, %v1072_v61 }
  0x1a   :  { %v3699_v28 = vld [vmem:[%s4731_s0 + $0x100] sm:$0xff]  ;;  %v3722_v62 = vld [vmem:[%s4730_s1 + $0x1ac] sm:$0xff] }
  0x1b   :  { %326 = vmatpush.bf16.msrb.mxu0 %v3653_v48  ;;  %390 = vmatpush.bf16.msrb.mxu1 %v3657_v49  ;;  %v3679_v48 = vld [vmem:[%s4731_s0 + $0xb0] sm:$0xff]  ;;  %v1203_v3 = vpack.c.b16 %v1200_v0, %v1200_v0  ;;  %v3319_v34 = vld [vmem:[%s4730_s1 + $0x1a0] sm:$0x3] }
  0x1c   :  { %v3685_v49 = vld [vmem:[%s4730_s1 + $0xf0] sm:$0xff]  ;;  %v1328_v35 = vunpack.c.l.b16 %v3319_v34  ;;  %v3726_v63 = vld [vmem:[%s4730_s1 + $0x1c0] sm:$0xff] }
  0x1d   :  { %454 = vmatpush.bf16.msrb.mxu2 %v3661_v50  ;;  %518 = vmatpush.bf16.msrb.mxu3 %v3665_v51  ;;  %v3689_v50 = vld [vmem:[%s4730_s1 + $0x104] sm:$0xff]  ;;  %v3697_v51 = vld [vmem:[%s4730_s1 + $0x12c] sm:$0xff] }
  0x1f   :  { %580 = vmatpush.bf16.msra.mxu0 %v573_v4  ;;  %644 = vmatpush.bf16.msra.mxu1 %v637_v7  ;;  %v1267_v4 = vpack.c.b16 %v1264_v1, %v1264_v1  ;;  %v1213_v7 = vsel %vm59_vm0, %v1203_v3, 0  ;;  %v3717_v3 = vld [vmem:[%s4730_s1 + $0x190] sm:$0xff] }
  0x21   :  { %708 = vmatpush.bf16.msra.mxu2 %v701_v5  ;;  %772 = vmatpush.bf16.msra.mxu3 %v765_v6  ;;  %v1085_v5 = vsel %vm59_vm0, %v1075_v2, 0  ;;  %v3692_v6 = vld [vmem:[%s4731_s0 + $0xe8] sm:$0xff] }
  0x22   :  { %2797 = vmatmul.msk.bf16.gmra.mxu0 %vm52_vm1, %v3636_v52  ;;  %2824 = vmatmul.msk.bf16.gmra.mxu1 %vm52_vm1, %v3640_v53  ;;  %v3668_v52 = vld [vmem:[%s4731_s0 + $0x88] sm:$0xff]  ;;  %v3672_v53 = vld [vmem:[%s4731_s0 + $0x98] sm:$0xff] }
  0x23   :  { %581 = vmatpush.bf16.msra.mxu0 %v3670_v8  ;;  %645 = vmatpush.bf16.msra.mxu1 %v3674_v11  ;;  %v1277_v8 = vsel %vm59_vm0, %v1267_v4, 0  ;;  %v3684_v11 = vld [vmem:[%s4731_s0 + $0xc8] sm:$0xff]  ;;  %v3725_v4 = vld [vmem:[%s4730_s1 + $0x1b8] sm:$0xff] }
  0x24   :  { %2851 = vmatmul.msk.bf16.gmra.mxu2 %vm52_vm1, %v3644_v54  ;;  %2878 = vmatmul.msk.bf16.gmra.mxu3 %vm52_vm1, %v3648_v55  ;;  %v3676_v54 = vld [vmem:[%s4731_s0 + $0xa8] sm:$0xff]  ;;  %v3680_v55 = vld [vmem:[%s4731_s0 + $0xb8] sm:$0xff] }
  0x25   :  { %709 = vmatpush.bf16.msra.mxu2 %v3678_v9  ;;  %773 = vmatpush.bf16.msra.mxu3 %v3682_v10  ;;  %v3696_v9 = vld [vmem:[%s4731_s0 + $0xf8] sm:$0xff] }
  0x26   :  { %v3688_v10 = vld [vmem:[%s4731_s0 + $0xd8] sm:$0xff] }
  0x27   :  { %582 = vmatpush.bf16.msra.mxu0 %v3669_v17  ;;  %646 = vmatpush.bf16.msra.mxu1 %v3673_v18  ;;  %v3702_v18 = vld [vmem:[%s4730_s1 + $0x148] sm:$0xff] }
  0x29   :  { %710 = vmatpush.bf16.msra.mxu2 %v3677_v12  ;;  %774 = vmatpush.bf16.msra.mxu3 %v3681_v19  ;;  %v3238_v12 = vld [vmem:[%s4730_s1 + $0x164] sm:$0x3]  ;;  %v3709_v19 = vld [vmem:[%s4730_s1 + $0x168] sm:$0xff] }
  0x32   :  { %2904 = vmatmul.msk.bf16.vlgmr.msrb.gmra.mxu0 %vm52_vm1, %v3651_v13  ;;  %2931 = vmatmul.msk.bf16.vlgmr.msrb.gmra.mxu1 %vm52_vm1, %v3655_v14  ;;  %v1136_v13 = vunpack.c.l.b16 %v3238_v12  ;;  %v3721_v12 = vld [vmem:[%s4730_s1 + $0x1a4] sm:$0xff] }
  0x33   :  { %836 = vmatpush.bf16.msrb.mxu0 %v829_v37  ;;  %900 = vmatpush.bf16.msrb.mxu1 %v893_v38 }
  0x34   :  { %2958 = vmatmul.msk.bf16.vlgmr.msrb.gmra.mxu2 %vm52_vm1, %v3659_v15  ;;  %2985 = vmatmul.msk.bf16.vlgmr.msrb.gmra.mxu3 %vm52_vm1, %v3663_v16  ;;  %v1139_v14 = vpack.c.b16 %v1136_v13, %v1136_v13  ;;  %v3710_v15 = vld [vmem:[%s4730_s1 + $0x170] sm:$0xff]  ;;  %v3714_v16 = vld [vmem:[%s4730_s1 + $0x184] sm:$0xff] }
  0x35   :  { %964 = vmatpush.bf16.msrb.mxu2 %v957_v36  ;;  %1028 = vmatpush.bf16.msrb.mxu3 %v1021_v39  ;;  %v1331_v36 = vpack.c.b16 %v1328_v35, %v1328_v35  ;;  %v3729_v13 = vld [vmem:[%s4730_s1 + $0x1cc] sm:$0xff] }
  0x36   :  { %v1149_v17 = vsel %vm59_vm0, %v1139_v14, 0  ;;  %v3719_v14 = vld [vmem:[%s4731_s0 + $0x150] sm:$0xff] }
  0x37   :  { %837 = vmatpush.bf16.msrb.mxu0 %v3686_v41  ;;  %901 = vmatpush.bf16.msrb.mxu1 %v3690_v42  ;;  %v1341_v37 = vsel %vm59_vm0, %v1331_v36, 0  ;;  %v3708_v42 = vld [vmem:[%s4731_s0 + $0x128] sm:$0xff] }
  0x39   :  { %965 = vmatpush.bf16.msrb.mxu2 %v3694_v40  ;;  %1029 = vmatpush.bf16.msrb.mxu3 %v3698_v43  ;;  %v3700_v43 = vld [vmem:[%s4731_s0 + $0x108] sm:$0xff] }
  0x3b   :  { %838 = vmatpush.bf16.msrb.mxu0 %v3685_v49  ;;  %902 = vmatpush.bf16.msrb.mxu1 %v3689_v50  ;;  %v3718_v50 = vld [vmem:[%s4730_s1 + $0x198] sm:$0xff] }
  0x3d   :  { %966 = vmatpush.bf16.msrb.mxu2 %v3693_v44  ;;  %1030 = vmatpush.bf16.msrb.mxu3 %v3697_v51  ;;  %v3704_v44 = vld [vmem:[%s4731_s0 + $0x118] sm:$0xff]  ;;  %v3373_v51 = vld [vmem:[%s4730_s1 + $0x1c8] sm:$0x3] }
  0x42   :  { %2905 = vmatmul.msk.bf16.gmra.mxu0 %vm52_vm1, %v3652_v20  ;;  %2932 = vmatmul.msk.bf16.gmra.mxu1 %vm52_vm1, %v3656_v21  ;;  %v3713_v20 = vld [vmem:[%s4730_s1 + $0x17c] sm:$0xff] }
  0x43   :  { %v3706_v21 = vld [vmem:[%s4730_s1 + $0x15c] sm:$0xff] }
  0x44   :  { %2959 = vmatmul.msk.bf16.gmra.mxu2 %vm52_vm1, %v3660_v22  ;;  %2986 = vmatmul.msk.bf16.gmra.mxu3 %vm52_vm1, %v3664_v23  ;;  %v3701_v22 = vld [vmem:[%s4730_s1 + $0x140] sm:$0xff]  ;;  %v3705_v23 = vld [vmem:[%s4730_s1 + $0x154] sm:$0xff] }
  0x52   :  { %3012 = vmatmul.msk.bf16.vlgmr.msra.gmra.mxu0 %vm52_vm1, %v3667_v45  ;;  %3039 = vmatmul.msk.bf16.vlgmr.msra.gmra.mxu1 %vm52_vm1, %v3671_v46  ;;  %v3712_v45 = vld [vmem:[%s4731_s0 + $0x138] sm:$0xff]  ;;  %v3346_v46 = vld [vmem:[%s4730_s1 + $0x1b4] sm:$0x3] }
  0x53   :  { %1092 = vmatpush.bf16.msra.mxu0 %v1085_v5  ;;  %1156 = vmatpush.bf16.msra.mxu1 %v1149_v17 }
  0x54   :  { %3066 = vmatmul.msk.bf16.vlgmr.msra.gmra.mxu2 %vm52_vm1, %v3675_v47  ;;  %3093 = vmatmul.msk.bf16.vlgmr.msra.gmra.mxu3 %vm52_vm1, %v3679_v48  ;;  %v3400_v47 = vld [vmem:[%s4730_s1 + $0x1dc] sm:$0x3]  ;;  %v1392_v48 = vunpack.c.l.b16 %v3346_v46 }
  0x55   :  { %1220 = vmatpush.bf16.msra.mxu2 %v1213_v7  ;;  %1284 = vmatpush.bf16.msra.mxu3 %v1277_v8  ;;  %v1520_v49 = vunpack.c.l.b16 %v3400_v47  ;;  %v3715_v7 = vld [vmem:[%s4731_s0 + $0x140] sm:$0xff] }
  0x56   :  { %v3723_v8 = vld [vmem:[%s4731_s0 + $0x160] sm:$0xff] }
  0x57   :  { %1093 = vmatpush.bf16.msra.mxu0 %v3702_v18  ;;  %1157 = vmatpush.bf16.msra.mxu1 %v3706_v21 }
  0x59   :  { %1221 = vmatpush.bf16.msra.mxu2 %v3710_v15  ;;  %1285 = vmatpush.bf16.msra.mxu3 %v3714_v16  ;;  %v3727_v15 = vld [vmem:[%s4731_s0 + $0x170] sm:$0xff] }
  0x5b   :  { %1094 = vmatpush.bf16.msra.mxu0 %v3701_v22  ;;  %1158 = vmatpush.bf16.msra.mxu1 %v3705_v23  ;;  %v3716_v22 = vld [vmem:[%s4731_s0 + $0x148] sm:$0xff]  ;;  %v3720_v23 = vld [vmem:[%s4731_s0 + $0x158] sm:$0xff] }
  0x5d   :  { %1222 = vmatpush.bf16.msra.mxu2 %v3709_v19  ;;  %1286 = vmatpush.bf16.msra.mxu3 %v3713_v20 }
  0x62   :  { %3013 = vmatmul.msk.bf16.gmra.mxu0 %vm52_vm1, %v3668_v52  ;;  %3040 = vmatmul.msk.bf16.gmra.mxu1 %vm52_vm1, %v3672_v53  ;;  %v1456_v52 = vunpack.c.l.b16 %v3373_v51  ;;  %v1395_v53 = vpack.c.b16 %v1392_v48, %v1392_v48  ;;  %v3734_v48 = vld [vmem:[%s4730_s1 + $0x1e8] sm:$0xff]  ;;  %v3742_v51 = vld [vmem:[%s4730_s1 + $0x210] sm:$0xff] }
  0x64   :  { %3067 = vmatmul.msk.bf16.gmra.mxu2 %vm52_vm1, %v3676_v54  ;;  %3094 = vmatmul.msk.bf16.gmra.mxu3 %vm52_vm1, %v3680_v55  ;;  %v1523_v54 = vpack.c.b16 %v1520_v49, %v1520_v49  ;;  %v1459_v55 = vpack.c.b16 %v1456_v52, %v1456_v52  ;;  %v3738_v49 = vld [vmem:[%s4730_s1 + $0x1fc] sm:$0xff] }
  0x66   :  { %v1469_v61 = vsel %vm59_vm0, %v1459_v55, 0  ;;  %v3741_v55 = vld [vmem:[%s4730_s1 + $0x208] sm:$0xff] }
  0x72   :  { %3120 = vmatmul.msk.bf16.vlgmr.msrb.gmra.mxu0 %vm52_vm1, %v3683_v56  ;;  %3147 = vmatmul.msk.bf16.vlgmr.msrb.gmra.mxu1 %vm52_vm1, %v3687_v57 }
  0x73   :  { %1348 = vmatpush.bf16.msrb.mxu0 %v1341_v37 }
  0x74   :  { %3174 = vmatmul.msk.bf16.vlgmr.msrb.gmra.mxu2 %vm52_vm1, %v3691_v58  ;;  %3201 = vmatmul.msk.bf16.vlgmr.msrb.gmra.mxu3 %vm52_vm1, %v3695_v59  ;;  %v1405_v58 = vsel %vm59_vm0, %v1395_v53, 0  ;;  %v1533_v59 = vsel %vm59_vm0, %v1523_v54, 0  ;;  %v3746_v54 = vld [vmem:[%s4730_s1 + $0x224] sm:$0xff] }
  0x75   :  { %1412 = vmatpush.bf16.msrb.mxu1 %v1405_v58  ;;  %1540 = vmatpush.bf16.msrb.mxu3 %v1533_v59 }
  0x76   :  { %1476 = vmatpush.bf16.msrb.mxu2 %v1469_v61  ;;  %v3733_v61 = vld [vmem:[%s4730_s1 + $0x1e0] sm:$0xff] }
  0x77   :  { %1349 = vmatpush.bf16.msrb.mxu0 %v3718_v50 }
  0x79   :  { %1413 = vmatpush.bf16.msrb.mxu1 %v3722_v62  ;;  %v3737_v62 = vld [vmem:[%s4730_s1 + $0x1f4] sm:$0xff] }
  0x7a   :  { %1477 = vmatpush.bf16.msrb.mxu2 %v3726_v63  ;;  %v3745_v63 = vld [vmem:[%s4730_s1 + $0x21c] sm:$0xff] }
  0x7b   :  { %1350 = vmatpush.bf16.msrb.mxu0 %v3717_v3  ;;  %v3743_v3 = vld [vmem:[%s4731_s0 + $0x1b0] sm:$0xff] }
  0x7d   :  { %1414 = vmatpush.bf16.msrb.mxu1 %v3721_v12  ;;  %v3736_v12 = vld [vmem:[%s4731_s0 + $0x198] sm:$0xff] }
  0x7e   :  { %1478 = vmatpush.bf16.msrb.mxu2 %v3725_v4 }
  0x82   :  { %3148 = vmatmul.msk.bf16.gmra.mxu1 %vm52_vm1, %v3688_v10  ;;  %3121 = vmatmul.msk.bf16.gmra.mxu0 %vm52_vm1, %v3684_v11 }
  0x84   :  { %3175 = vmatmul.msk.bf16.gmra.mxu2 %vm52_vm1, %v3692_v6  ;;  %3202 = vmatmul.msk.bf16.gmra.mxu3 %vm52_vm1, %v3696_v9  ;;  %v3730_v6 = vld [vmem:[%s4730_s1 + $0x1d4] sm:$0xff] }
  0x85   :  { %1541 = vmatpush.bf16.msrb.mxu3 %v3730_v6 }
  0x89   :  { %1542 = vmatpush.bf16.msrb.mxu3 %v3729_v13 }
  0x8f   :  { %v4165_v24 = vpop.f32.mrf.mxu0  ;;  %v136_v25 = vpop.f32.mrf.mxu1 }
  0x90   :  { %2070 = vrot.lane.b32.xlu0 %v136_v25, %s3795_s21  ;;  %v3724_v25 = vld [vmem:[%s4731_s0 + $0x168] sm:$0xff] }
  0x92   :  { %3228 = vmatmul.msk.bf16.vlgmr.msra.gmra.mxu0 %vm52_vm1, %v3699_v28  ;;  %3255 = vmatmul.msk.bf16.vlgmr.msra.gmra.mxu1 %vm52_vm1, %v3703_v29  ;;  %v3728_v28 = vld [vmem:[%s4731_s0 + $0x178] sm:$0xff] }
  0x94   :  { %3282 = vmatmul.msk.bf16.vlgmr.msra.gmra.mxu2 %vm52_vm1, %v3707_v26  ;;  %3309 = vmatmul.msk.bf16.vlgmr.msra.gmra.mxu3 %vm52_vm1, %v3711_v27  ;;  %v3427_v26 = vld [vmem:[%s4730_s1 + $0x1f0] sm:$0x3]  ;;  %v3454_v27 = vld [vmem:[%s4730_s1 + $0x204] sm:$0x3] }
  0x97   :  { %v200_v30 = vpop.f32.mrf.mxu2  ;;  %v264_v31 = vpop.f32.mrf.mxu3 }
  0x98   :  { %2086 = vrot.lane.b32.xlu2 %v200_v30, %s3796_s26  ;;  %v4185_v32 = vpop.f32.mrf.mxu0  ;;  %v138_v33 = vpop.f32.mrf.mxu1  ;;  %v1584_v30 = vunpack.c.l.b16 %v3427_v26  ;;  %v3562_v26 = vld [vmem:[%s4730_s1 + $0x254] sm:$0x3] }
  0x99   :  { %2072 = vrot.lane.b32.xlu0 %v138_v33, %s3795_s21  ;;  %v3508_v33 = vld [vmem:[%s4730_s1 + $0x22c] sm:$0x3] }
  0x9a   :  { %v1776_v34 = vunpack.c.l.b16 %v3508_v33  ;;  %v1587_v36 = vpack.c.b16 %v1584_v30, %v1584_v30  ;;  %v1904_v30 = vunpack.c.l.b16 %v3562_v26  ;;  %v3758_v33 = vld [vmem:[%s4730_s1 + $0x260] sm:$0xff] }
  0x9f   :  { %v202_v38 = vpop.f32.mrf.mxu2  ;;  %v266_v39 = vpop.f32.mrf.mxu3 }
  0xa0   :  { %2102 = vrot.lane.b32.xlu2 %v264_v31, %s3797_s29  ;;  %v4193_v40 = vpop.f32.mrf.mxu0  ;;  %v141_v41 = vpop.f32.mrf.mxu1  ;;  %v1648_v31 = vunpack.c.l.b16 %v3454_v27 }
  0xa1   :  { %2104 = vrot.lane.b32.xlu0 %v266_v39, %s3797_s29  ;;  %2074 = vrot.lane.b32.xlu1 %v141_v41, %s3795_s21  ;;  %v1779_v41 = vpack.c.b16 %v1776_v34, %v1776_v34 }
  0xa2   :  { %3229 = vmatmul.msk.bf16.gmra.mxu0 %vm52_vm1, %v3700_v43  ;;  %3256 = vmatmul.msk.bf16.gmra.mxu1 %vm52_vm1, %v3704_v44  ;;  %v1651_v37 = vpack.c.b16 %v1648_v31, %v1648_v31  ;;  %v1597_v43 = vsel %vm59_vm0, %v1587_v36, 0  ;;  %v3616_v31 = vld [vmem:[%s4730_s1 + $0x27c] sm:$0x3]  ;;  %v1907_v36 = vpack.c.b16 %v1904_v30, %v1904_v30  ;;  %v3756_v30 = vld [vmem:[%s4731_s0 + $0x1e8] sm:$0xff] }
  0xa3   :  { %1604 = vmatpush.bf16.msra.mxu0 %v1597_v43 }
  0xa4   :  { %3283 = vmatmul.msk.bf16.gmra.mxu2 %vm52_vm1, %v3708_v42  ;;  %3310 = vmatmul.msk.bf16.gmra.mxu3 %vm52_vm1, %v3712_v45  ;;  %v1661_v44 = vsel %vm59_vm0, %v1651_v37, 0  ;;  %v1789_v45 = vsel %vm59_vm0, %v1779_v41, 0  ;;  %v3757_v41 = vld [vmem:[%s4730_s1 + $0x258] sm:$0xff] }
  0xa5   :  { %1668 = vmatpush.bf16.msra.mxu1 %v1661_v44  ;;  %1796 = vmatpush.bf16.msra.mxu3 %v1789_v45 }
  0xa7   :  { %v205_v56 = vpop.f32.mrf.mxu2  ;;  %v269_v57 = vpop.f32.mrf.mxu3  ;;  %1605 = vmatpush.bf16.msra.mxu0 %v3734_v48 }
  0xa8   :  { %2088 = vrot.lane.b32.xlu2 %v202_v38, %s3796_s26  ;;  %v4228_v60 = vpop.f32.mrf.mxu0  ;;  %v143_v0 = vpop.f32.mrf.mxu1  ;;  %v3481_v38 = vld [vmem:[%s4730_s1 + $0x218] sm:$0x3] }
  0xa9   :  { %2090 = vrot.lane.b32.xlu0 %v205_v56, %s3796_s26  ;;  %2106 = vrot.lane.b32.xlu1 %v269_v57, %s3797_s29  ;;  %v1712_v42 = vunpack.c.l.b16 %v3481_v38  ;;  %v3739_v56 = vld [vmem:[%s4731_s0 + $0x1a0] sm:$0xff] }
  0xaa   :  { %1669 = vmatpush.bf16.msra.mxu1 %v3738_v49  ;;  %1797 = vmatpush.bf16.msra.mxu3 %v3746_v54 }
  0xab   :  { %v1715_v46 = vpack.c.b16 %v1712_v42, %v1712_v42  ;;  %1606 = vmatpush.bf16.msra.mxu0 %v3733_v61  ;;  %v3747_v61 = vld [vmem:[%s4731_s0 + $0x1c0] sm:$0xff] }
  0xad   :  { %v1725_v47 = vsel %vm59_vm0, %v1715_v46, 0  ;;  %v3750_v46 = vld [vmem:[%s4730_s1 + $0x238] sm:$0xff] }
  0xae   :  { %1732 = vmatpush.bf16.msra.mxu2 %v1725_v47  ;;  %1670 = vmatpush.bf16.msra.mxu1 %v3737_v62  ;;  %v3754_v47 = vld [vmem:[%s4730_s1 + $0x24c] sm:$0xff] }
  0xaf   :  { %v207_v1 = vpop.f32.mrf.mxu2  ;;  %v271_v2 = vpop.f32.mrf.mxu3  ;;  %1798 = vmatpush.bf16.msra.mxu3 %v3745_v63 }
  0xb0   :  { %2108 = vrot.lane.b32.xlu2 %v271_v2, %s3797_s29  ;;  %v328_v5 = vpop.f32.mrf.mxu0  ;;  %v392_v9 = vpop.f32.mrf.mxu1  ;;  %v3735_v2 = vld [vmem:[%s4731_s0 + $0x190] sm:$0xff] }
  0xb1   :  { %2076 = vrot.lane.b32.xlu1 %v143_v0, %s3795_s21  ;;  %2118 = vrot.lane.b32.xlu0 %v328_v5, %s3798_s7 }
  0xb2   :  { %3336 = vmatmul.msk.bf16.vlgmr.msrb.gmra.mxu0 %vm52_vm1, %v3715_v7  ;;  %3363 = vmatmul.msk.bf16.vlgmr.msrb.gmra.mxu1 %vm52_vm1, %v3719_v14 }
  0xb3   :  { %1733 = vmatpush.bf16.msra.mxu2 %v3742_v51  ;;  %v3755_v51 = vld [vmem:[%s4731_s0 + $0x1e0] sm:$0xff] }
  0xb4   :  { %3390 = vmatmul.msk.bf16.vlgmr.msrb.gmra.mxu2 %vm52_vm1, %v3723_v8  ;;  %3417 = vmatmul.msk.bf16.vlgmr.msrb.gmra.mxu3 %vm52_vm1, %v3727_v15  ;;  %v3740_v15 = vld [vmem:[%s4731_s0 + $0x1a8] sm:$0xff] }
  0xb7   :  { %v456_v10 = vpop.f32.mrf.mxu2  ;;  %v520_v11 = vpop.f32.mrf.mxu3  ;;  %1734 = vmatpush.bf16.msra.mxu2 %v3741_v55 }
  0xb8   :  { %2150 = vrot.lane.b32.xlu2 %v456_v10, %s3799_s16  ;;  %v330_v16 = vpop.f32.mrf.mxu0  ;;  %v394_v17 = vpop.f32.mrf.mxu1 }
  0xb9   :  { %2092 = vrot.lane.b32.xlu1 %v207_v1, %s3796_s26  ;;  %2166 = vrot.lane.b32.xlu0 %v520_v11, %s3800_s17  ;;  %v3731_v1 = vld [vmem:[%s4731_s0 + $0x180] sm:$0xff]  ;;  %v3732_v11 = vld [vmem:[%s4731_s0 + $0x188] sm:$0xff] }
  0xbf   :  { %v458_v18 = vpop.f32.mrf.mxu2  ;;  %v522_v19 = vpop.f32.mrf.mxu3 }
  0xc0   :  { %2136 = vrot.lane.b32.xlu2 %v394_v17, %s3801_s23  ;;  %v333_v20 = vpop.f32.mrf.mxu0  ;;  %v397_v21 = vpop.f32.mrf.mxu1  ;;  %v3589_v17 = vld [vmem:[%s4730_s1 + $0x268] sm:$0x3] }
  0xc1   :  { %2134 = vrot.lane.b32.xlu1 %v392_v9, %s3801_s23  ;;  %2152 = vrot.lane.b32.xlu0 %v458_v18, %s3799_s16  ;;  %v1968_v18 = vunpack.c.l.b16 %v3589_v17 }
  0xc2   :  { %3337 = vmatmul.msk.bf16.gmra.mxu0 %vm52_vm1, %v3716_v22  ;;  %3364 = vmatmul.msk.bf16.gmra.mxu1 %vm52_vm1, %v3720_v23 }
  0xc4   :  { %3391 = vmatmul.msk.bf16.gmra.mxu2 %vm52_vm1, %v3724_v25  ;;  %3418 = vmatmul.msk.bf16.gmra.mxu3 %vm52_vm1, %v3728_v28  ;;  %v3535_v25 = vld [vmem:[%s4730_s1 + $0x240] sm:$0x3] }
  0xc7   :  { %v461_v29 = vpop.f32.mrf.mxu2  ;;  %v525_v35 = vpop.f32.mrf.mxu3 }
  0xc8   :  { %2122 = vrot.lane.b32.xlu2 %v333_v20, %s3798_s7  ;;  %v335_v39 = vpop.f32.mrf.mxu0  ;;  %v399_v50 = vpop.f32.mrf.mxu1 }
  0xc9   :  { %2138 = vrot.lane.b32.xlu0 %v397_v21, %s3801_s23  ;;  %2120 = vrot.lane.b32.xlu1 %v330_v16, %s3798_s7  ;;  %v3744_v16 = vld [vmem:[%s4731_s0 + $0x1b8] sm:$0xff] }
  0xcf   :  { %v463_v52 = vpop.f32.mrf.mxu2  ;;  %v527_v53 = vpop.f32.mrf.mxu3 }
  0xd0   :  { %2170 = vrot.lane.b32.xlu2 %v525_v35, %s3800_s17  ;;  %v584_v57 = vpop.f32.mrf.mxu0  ;;  %v648_v58 = vpop.f32.mrf.mxu1  ;;  %v2032_v35 = vunpack.c.l.b16 %v3616_v31 }
  0xd1   :  { %2168 = vrot.lane.b32.xlu1 %v522_v19, %s3800_s17  ;;  %2124 = vrot.lane.b32.xlu0 %v335_v39, %s3798_s7  ;;  %v1971_v19 = vpack.c.b16 %v1968_v18, %v1968_v18  ;;  %v1917_v39 = vsel %vm59_vm0, %v1907_v36, 0 }
  0xd2   :  { %3444 = vmatmul.msk.bf16.vlgmr.msra.gmra.mxu0 %vm52_vm1, %v3731_v1  ;;  %3471 = vmatmul.msk.bf16.vlgmr.msra.gmra.mxu1 %vm52_vm1, %v3735_v2  ;;  %v2035_v38 = vpack.c.b16 %v2032_v35, %v2032_v35  ;;  %v3759_v2 = vld [vmem:[%s4731_s0 + $0x1f0] sm:$0xff] }
  0xd3   :  { %v1981_v22 = vsel %vm59_vm0, %v1971_v19, 0  ;;  %1924 = vmatpush.bf16.msrb.mxu1 %v1917_v39 }
  0xd4   :  { %3498 = vmatmul.msk.bf16.vlgmr.msra.gmra.mxu2 %vm52_vm1, %v3739_v56  ;;  %3525 = vmatmul.msk.bf16.vlgmr.msra.gmra.mxu3 %vm52_vm1, %v3743_v3  ;;  %v2045_v43 = vsel %vm59_vm0, %v2035_v38, 0  ;;  %v3753_v56 = vld [vmem:[%s4730_s1 + $0x244] sm:$0xff] }
  0xd5   :  { %1988 = vmatpush.bf16.msrb.mxu2 %v1981_v22  ;;  %2052 = vmatpush.bf16.msrb.mxu3 %v2045_v43 }
  0xd7   :  { %v712_v59 = vpop.f32.mrf.mxu2  ;;  %v776_v0 = vpop.f32.mrf.mxu3  ;;  %1925 = vmatpush.bf16.msrb.mxu1 %v3754_v47 }
  0xd8   :  { %2156 = vrot.lane.b32.xlu2 %v463_v52, %s3799_s16  ;;  %v586_v4 = vpop.f32.mrf.mxu0  ;;  %v650_v5 = vpop.f32.mrf.mxu1  ;;  %v3762_v52 = vld [vmem:[%s4730_s1 + $0x274] sm:$0xff] }
  0xd9   :  { %2154 = vrot.lane.b32.xlu1 %v461_v29, %s3799_s16  ;;  %2172 = vrot.lane.b32.xlu0 %v527_v53, %s3800_s17  ;;  %v1840_v29 = vunpack.c.l.b16 %v3535_v25 }
  0xda   :  { %1989 = vmatpush.bf16.msrb.mxu2 %v3758_v33  ;;  %2053 = vmatpush.bf16.msrb.mxu3 %v3762_v52 }
  0xdb   :  { %v1843_v34 = vpack.c.b16 %v1840_v29, %v1840_v29  ;;  %1926 = vmatpush.bf16.msrb.mxu1 %v3753_v56 }
  0xdd   :  { %v1853_v37 = vsel %vm59_vm0, %v1843_v34, 0  ;;  %vm2696_vm0 = vcmask 523264  }
  0xde   :  { %1860 = vmatpush.bf16.msrb.mxu0 %v1853_v37  ;;  %1990 = vmatpush.bf16.msrb.mxu2 %v3757_v41 }
  0xdf   :  { %v714_v6 = vpop.f32.mrf.mxu2  ;;  %v778_v7 = vpop.f32.mrf.mxu3 }
  0xe0   :  { %2198 = vrot.lane.b32.xlu2 %v648_v58, %s3802_s14  ;;  %v589_v8 = vpop.f32.mrf.mxu0  ;;  %v653_v9 = vpop.f32.mrf.mxu1  ;;  %v3761_v58 = vld [vmem:[%s4730_s1 + $0x26c] sm:$0xff] }
  0xe1   :  { %2140 = vrot.lane.b32.xlu1 %v399_v50, %s3801_s23  ;;  %2214 = vrot.lane.b32.xlu0 %v712_v59, %s3803_s15  ;;  %v3751_v59 = vld [vmem:[%s4731_s0 + $0x1d0] sm:$0xff] }
  0xe2   :  { %3445 = vmatmul.msk.bf16.gmra.mxu0 %vm52_vm1, %v3732_v11  ;;  %3472 = vmatmul.msk.bf16.gmra.mxu1 %vm52_vm1, %v3736_v12 }
  0xe3   :  { %1861 = vmatpush.bf16.msrb.mxu0 %v3750_v46  ;;  %2054 = vmatpush.bf16.msrb.mxu3 %v3761_v58 }
  0xe4   :  { %3499 = vmatmul.msk.bf16.gmra.mxu2 %vm52_vm1, %v3740_v15  ;;  %3526 = vmatmul.msk.bf16.gmra.mxu3 %vm52_vm1, %v3744_v16  ;;  %v3748_v15 = vld [vmem:[%s4731_s0 + $0x1c8] sm:$0xff] }
  0xe7   :  { %v717_v13 = vpop.f32.mrf.mxu2  ;;  %v781_v14 = vpop.f32.mrf.mxu3 }
  0xe8   :  { %2184 = vrot.lane.b32.xlu2 %v586_v4, %s3804_s30  ;;  %v591_v20 = vpop.f32.mrf.mxu0  ;;  %v655_v23 = vpop.f32.mrf.mxu1 }
  0xe9   :  { %2200 = vrot.lane.b32.xlu0 %v650_v5, %s3802_s14  ;;  %2182 = vrot.lane.b32.xlu1 %v584_v57, %s3804_s30 }
  0xef   :  { %v719_v27 = vpop.f32.mrf.mxu2  ;;  %v4398_v28 = vpop.f32.mrf.mxu3 }
  0xf0   :  { %2232 = vrot.lane.b32.xlu2 %v778_v7, %s3805_s5  ;;  %v840_v45 = vpop.f32.mrf.mxu0  ;;  %v904_v49 = vpop.f32.mrf.mxu1 }
  0xf1   :  { %2230 = vrot.lane.b32.xlu1 %v776_v0, %s3805_s5  ;;  %2186 = vrot.lane.b32.xlu0 %v589_v8, %s3804_s30 }
  0xf2   :  { %v2087_v10 = vpop.permute.xlu2 %2086  ;;  %3579 = vmatmul.msk.bf16.vlgmr.msrb.gmra.mxu1 %vm52_vm1, %v3751_v59 }
  0xf4   :  { %3606 = vmatmul.msk.bf16.vlgmr.msrb.gmra.mxu2 %vm52_vm1, %v3755_v51  ;;  %3633 = vmatmul.msk.bf16.vlgmr.msrb.gmra.mxu3 %vm52_vm1, %v3759_v2 }
  0xf7   :  { %v968_v50 = vpop.f32.mrf.mxu2  ;;  %v1032_v54 = vpop.f32.mrf.mxu3 }
  0xf8   :  { %2218 = vrot.lane.b32.xlu2 %v717_v13, %s3803_s15  ;;  %v842_v0 = vpop.f32.mrf.mxu0  ;;  %v906_v1 = vpop.f32.mrf.mxu1 }
  0xf9   :  { %2216 = vrot.lane.b32.xlu1 %v714_v6, %s3803_s15  ;;  %2234 = vrot.lane.b32.xlu0 %v781_v14, %s3805_s5  ;;  %v3752_v14 = vld [vmem:[%s4731_s0 + $0x1d8] sm:$0xff] }
  0xfa   :  { %v2103_v21 = vpop.permute.xlu2 %2102 }
  0xff   :  { %v970_v4 = vpop.f32.mrf.mxu2  ;;  %v1034_v5 = vpop.f32.mrf.mxu3 }
 0x100   :  { %2204 = vrot.lane.b32.xlu2 %v655_v23, %s3802_s14 }
 0x101   :  { %2202 = vrot.lane.b32.xlu1 %v653_v9, %s3802_s14  ;;  %2220 = vrot.lane.b32.xlu0 %v719_v27, %s3803_s15  ;;  %v845_v9 = vpop.f32.mrf.mxu0 }
 0x102   :  { %v2089_v42 = vpop.permute.xlu2 %2088  ;;  %v2071_v44 = vpop.permute.xlu0 %2070  ;;  %3580 = vmatmul.msk.bf16.gmra.mxu1 %vm52_vm1, %v3752_v14 }
 0x103   :  { %v2307_v48 = vsel %vm2306_vm2, %v4165_v24, %v2071_v44  ;;  %v3749_v24 = vld [vmem:[%s4730_s1 + $0x230] sm:$0xff]  ;;  %s3808_s1 = smov 60  }
 0x104   :  { %v2312_v53 = vsel %vm2311_vm3, %v2307_v48, %v2087_v10  ;;  %1862 = vmatpush.bf16.msrb.mxu0 %v3749_v24  ;;  %v909_v10 = vpop.f32.mrf.mxu1  ;;  %3607 = vmatmul.msk.bf16.gmra.mxu2 %vm52_vm1, %v3756_v30 }
 0x105   :  { %v4431_v55 = vsel %vm2316_vm4, %v2312_v53, %v2103_v21 }
 0x107   :  { %3552 = vmatmul.msk.bf16.vlgmr.msrb.gmra.mxu0 %vm52_vm1, %v3747_v61  ;;  %v973_v11 = vpop.f32.mrf.mxu2  ;;  %v1037_v12 = vpop.f32.mrf.mxu3 }
 0x108   :  { %2246 = vrot.lane.b32.xlu2 %v840_v45, %s3806_s9 }
 0x109   :  { %2262 = vrot.lane.b32.xlu0 %v904_v49, %s3807_s10  ;;  %2188 = vrot.lane.b32.xlu1 %v591_v20, %s3804_s30  ;;  %v847_v21 = vpop.f32.mrf.mxu0 }
 0x10a   :  { %v4443_v57 = vpop.permute.xlu2 %2108 }
 0x10b   :  { %v2073_v62 = vpop.permute.xlu0 %2072 }
 0x10c   :  { %v2308_v63 = vsel %vm2306_vm2, %v4185_v32, %v2073_v62  ;;  %v911_v22 = vpop.f32.mrf.mxu1 }
 0x10d   :  { %v2313_v3 = vsel %vm2311_vm3, %v2308_v63, %v2089_v42  ;;  %v3760_v42 = vld [vmem:[%s4731_s0 + $0x1f8] sm:$0xff]  ;;  %s3810_s0 = smov 64  }
 0x10e   :  { %3634 = vmatmul.msk.bf16.gmra.mxu3 %vm52_vm1, %v3760_v42 }
 0x10f   :  { %v975_v23 = vpop.f32.mrf.mxu2  ;;  %v1039_v25 = vpop.f32.mrf.mxu3 }
 0x110   :  { %2294 = vrot.lane.b32.xlu2 %v1032_v54, %s3808_s1 }
 0x111   :  { %2236 = vrot.lane.b32.xlu1 %v4398_v28, %s3805_s5  ;;  %2248 = vrot.lane.b32.xlu0 %v842_v0, %s3806_s9  ;;  %v4498_v31 = vpop.f32.mrf.mxu0 }
 0x112   :  { %v4467_v32 = vpop.permute.xlu2 %2150 }
 0x113   :  { %v2105_v6 = vpop.permute.xlu0 %2104  ;;  %v2075_v7 = vpop.permute.xlu1 %2074 }
 0x114   :  { %v4470_v8 = vsel %vm2316_vm4, %v2313_v3, %v2105_v6  ;;  %v2309_v16 = vsel %vm2306_vm2, %v4193_v40, %v2075_v7  ;;  %v1160_v33 = vpop.f32.mrf.mxu1 }
 0x117   :  { %3553 = vmatmul.msk.bf16.gmra.mxu0 %vm52_vm1, %v3748_v15  ;;  %v1224_v35 = vpop.f32.mrf.mxu2  ;;  %v1288_v41 = vpop.f32.mrf.mxu3 }
 0x118   :  { %2280 = vrot.lane.b32.xlu2 %v970_v4, %s3809_s25 }
 0x119   :  { %2278 = vrot.lane.b32.xlu1 %v968_v50, %s3809_s25  ;;  %2296 = vrot.lane.b32.xlu0 %v1034_v5, %s3808_s1  ;;  %v4514_v44 = vpop.f32.mrf.mxu0 }
 0x11a   :  { %v4475_v13 = vpop.permute.xlu2 %2136 }
 0x11b   :  { %v2091_v17 = vpop.permute.xlu0 %2090  ;;  %v2107_v18 = vpop.permute.xlu1 %2106 }
 0x11c   :  { %v2314_v19 = vsel %vm2311_vm3, %v2309_v16, %v2091_v17  ;;  %v1162_v45 = vpop.f32.mrf.mxu1 }
 0x11d   :  { %v2319_v20 = vsel %vm2316_vm4, %v2314_v19, %v2107_v18 }
 0x11f   :  { %v1226_v49 = vpop.f32.mrf.mxu2  ;;  %v1290_v51 = vpop.f32.mrf.mxu3 }
 0x120   :  { %2266 = vrot.lane.b32.xlu2 %v909_v10, %s3807_s10 }
 0x121   :  { %2264 = vrot.lane.b32.xlu1 %v906_v1, %s3807_s10  ;;  %2282 = vrot.lane.b32.xlu0 %v973_v11, %s3809_s25  ;;  %v4525_v54 = vpop.f32.mrf.mxu0 }
 0x122   :  { %v2123_v40 = vpop.permute.xlu2 %2122 }
 0x123   :  { %v2324_v26 = vsel %vm2321_vm5, %v2319_v20, %v2123_v40  ;;  %v2077_v27 = vpop.permute.xlu1 %2076  ;;  %v2119_v28 = vpop.permute.xlu0 %2118 }
 0x124   :  { %v2322_v29 = vsel %vm2321_vm5, %v4431_v55, %v2119_v28  ;;  %v2310_v36 = vsel %vm2306_vm2, %v4228_v60, %v2077_v27  ;;  %v1165_v58 = vpop.f32.mrf.mxu1 }
 0x127   :  { %v1229_v61 = vpop.f32.mrf.mxu2  ;;  %v1293_v0 = vpop.f32.mrf.mxu3 }
 0x128   :  { %2252 = vrot.lane.b32.xlu2 %v847_v21, %s3806_s9 }
 0x129   :  { %2268 = vrot.lane.b32.xlu0 %v911_v22, %s3807_s10  ;;  %2250 = vrot.lane.b32.xlu1 %v845_v9, %s3806_s9  ;;  %v4538_v5 = vpop.f32.mrf.mxu0 }
 0x12a   :  { %v2171_v34 = vpop.permute.xlu2 %2170 }
 0x12b   :  { %v2093_v37 = vpop.permute.xlu1 %2092  ;;  %v2167_v38 = vpop.permute.xlu0 %2166 }
 0x12c   :  { %v2315_v39 = vsel %vm2311_vm3, %v2310_v36, %v2093_v37  ;;  %v1167_v6 = vpop.f32.mrf.mxu1 }
 0x12d   :  { %v2320_v43 = vsel %vm2316_vm4, %v2315_v39, %v4443_v57 }
 0x130   :  { %2300 = vrot.lane.b32.xlu2 %v1039_v25, %s3808_s1 }
 0x131   :  { %2384 = vrot.lane.b32.xlu0 %v1160_v33, %s3795_s21  ;;  %2298 = vrot.lane.b32.xlu1 %v1037_v12, %s3808_s1  ;;  %v1295_v12 = vpop.f32.mrf.mxu3  ;;  %v1352_v14 = vpop.f32.mrf.mxu0 }
 0x132   :  { %v2157_v60 = vpop.permute.xlu2 %2156 }
 0x133   :  { %v2135_v46 = vpop.permute.xlu1 %2134  ;;  %v2153_v47 = vpop.permute.xlu0 %2152 }
 0x134   :  { %v2327_v48 = vsel %vm2326_vm6, %v2322_v29, %v2135_v46  ;;  %v1416_v16 = vpop.f32.mrf.mxu1 }
 0x135   :  { %v2332_v50 = vsel %vm2331_vm7, %v2327_v48, %v4467_v32 }
 0x136   :  { %v2337_v52 = vsel %vm2336_vm8, %v2332_v50, %v2167_v38 }
 0x138   :  { %2416 = vrot.lane.b32.xlu2 %v1288_v41, %s3797_s29 }
 0x139   :  { %2418 = vrot.lane.b32.xlu0 %v1290_v51, %s3797_s29  ;;  %2284 = vrot.lane.b32.xlu1 %v975_v23, %s3809_s25  ;;  %v1544_v40 = vpop.f32.mrf.mxu3  ;;  %v1354_v30 = vpop.f32.mrf.mxu0 }
 0x13a   :  { %v2199_v53 = vpop.permute.xlu2 %2198 }
 0x13b   :  { %v2139_v55 = vpop.permute.xlu0 %2138  ;;  %v2121_v24 = vpop.permute.xlu1 %2120 }
 0x13c   :  { %v2329_v56 = vsel %vm2326_vm6, %v2324_v26, %v2139_v55  ;;  %v2323_v57 = vsel %vm2321_vm5, %v4470_v8, %v2121_v24  ;;  %v1231_v8 = vpop.f32.mrf.mxu2  ;;  %v1418_v29 = vpop.f32.mrf.mxu1 }
 0x13d   :  { %v2328_v59 = vsel %vm2326_vm6, %v2323_v57, %v4475_v13 }
 0x13e   :  { %v2333_v62 = vsel %vm2331_vm7, %v2328_v59, %v2153_v47 }
 0x140   :  { %2402 = vrot.lane.b32.xlu2 %v1226_v49, %s3796_s26 }
 0x141   :  { %2404 = vrot.lane.b32.xlu0 %v1229_v61, %s3796_s26  ;;  %2400 = vrot.lane.b32.xlu1 %v1224_v35, %s3796_s26  ;;  %v1546_v37 = vpop.f32.mrf.mxu3 }
 0x142   :  { %v2185_v63 = vpop.permute.xlu2 %2184 }
 0x143   :  { %v2169_v1 = vpop.permute.xlu1 %2168  ;;  %v2125_v2 = vpop.permute.xlu0 %2124 }
 0x144   :  { %v2338_v3 = vsel %vm2336_vm8, %v2333_v62, %v2169_v1  ;;  %v2325_v4 = vsel %vm2321_vm5, %v2320_v43, %v2125_v2  ;;  %v1480_v21 = vpop.f32.mrf.mxu2  ;;  %v1357_v43 = vpop.f32.mrf.mxu0 }
 0x145   :  { %v2343_v32 = vsel %vm2341_vm9, %v2338_v3, %v2185_v63 }
 0x148   :  { %2388 = vrot.lane.b32.xlu2 %v1165_v58, %s3795_s21 }
 0x149   :  { %2390 = vrot.lane.b32.xlu0 %v1167_v6, %s3795_s21  ;;  %2386 = vrot.lane.b32.xlu1 %v1162_v45, %s3795_s21  ;;  %v1421_v45 = vpop.f32.mrf.mxu1  ;;  %v1549_v51 = vpop.f32.mrf.mxu3 }
 0x14a   :  { %v2233_v7 = vpop.permute.xlu2 %2232 }
 0x14b   :  { %v2155_v9 = vpop.permute.xlu1 %2154  ;;  %v2173_v10 = vpop.permute.xlu0 %2172 }
 0x14c   :  { %v2334_v11 = vsel %vm2331_vm7, %v2329_v56, %v2155_v9 }
 0x14d   :  { %v2339_v13 = vsel %vm2336_vm8, %v2334_v11, %v2171_v34  ;;  %v1482_v34 = vpop.f32.mrf.mxu2 }
 0x150   :  { %2422 = vrot.lane.b32.xlu2 %v1295_v12, %s3797_s29 }
 0x151   :  { %2420 = vrot.lane.b32.xlu1 %v1293_v0, %s3797_s29  ;;  %2432 = vrot.lane.b32.xlu0 %v1352_v14, %s3798_s7  ;;  %v1423_v55 = vpop.f32.mrf.mxu1  ;;  %v1551_v62 = vpop.f32.mrf.mxu3 }
 0x152   :  { %v2219_v15 = vpop.permute.xlu2 %2218 }
 0x153   :  { %v2141_v17 = vpop.permute.xlu1 %2140  ;;  %v2215_v18 = vpop.permute.xlu0 %2214 }
 0x154   :  { %v2330_v19 = vsel %vm2326_vm6, %v2325_v4, %v2141_v17 }
 0x155   :  { %v2335_v20 = vsel %vm2331_vm7, %v2330_v19, %v2157_v60  ;;  %v1485_v47 = vpop.f32.mrf.mxu2 }
 0x156   :  { %v4552_v22 = vsel %vm2336_vm8, %v2335_v20, %v2173_v10 }
 0x158   :  { %2464 = vrot.lane.b32.xlu2 %v1480_v21, %s3799_s16 }
 0x159   :  { %2406 = vrot.lane.b32.xlu1 %v1231_v8, %s3796_s26  ;;  %2448 = vrot.lane.b32.xlu0 %v1416_v16, %s3801_s23  ;;  %v1672_v1 = vpop.f32.mrf.mxu1  ;;  %v1800_v10 = vpop.f32.mrf.mxu3 }
 0x15a   :  { %v2205_v23 = vpop.permute.xlu2 %2204 }
 0x15b   :  { %v2201_v25 = vpop.permute.xlu0 %2200  ;;  %v2183_v26 = vpop.permute.xlu1 %2182 }
 0x15c   :  { %v2347_v27 = vsel %vm52_vm1, %v2343_v32, %v2201_v25  ;;  %v2342_v28 = vsel %vm2341_vm9, %v2337_v52, %v2183_v26 }
 0x15d   :  { %v2346_v33 = vsel %vm52_vm1, %v2342_v28, %v2199_v53  ;;  %v1359_v53 = vpop.f32.mrf.mxu0  ;;  %v1487_v56 = vpop.f32.mrf.mxu2 }
 0x15e   :  { %v2351_v35 = vsel %vm2350_vm10, %v2346_v33, %v2215_v18 }
 0x160   :  { %2480 = vrot.lane.b32.xlu2 %v1544_v40, %s3800_s17 }
 0x161   :  { %2466 = vrot.lane.b32.xlu0 %v1482_v34, %s3799_s16  ;;  %2434 = vrot.lane.b32.xlu1 %v1354_v30, %s3798_s7  ;;  %v1802_v20 = vpop.f32.mrf.mxu3 }
 0x162   :  { %v2247_v36 = vpop.permute.xlu2 %2246 }
 0x163   :  { %v2231_v38 = vpop.permute.xlu1 %2230  ;;  %v2187_v39 = vpop.permute.xlu0 %2186 }
 0x164   :  { %v2356_v41 = vsel %vm2355_vm11, %v2351_v35, %v2231_v38  ;;  %v2344_v42 = vsel %vm2341_vm9, %v2339_v13, %v2187_v39  ;;  %v1674_v13 = vpop.f32.mrf.mxu1 }
 0x165   :  { %v2361_v60 = vsel %vm2360_vm12, %v2356_v41, %v2247_v36  ;;  %v1608_v63 = vpop.f32.mrf.mxu0  ;;  %v1736_v8 = vpop.f32.mrf.mxu2 }
 0x168   :  { %2436 = vrot.lane.b32.xlu2 %v1357_v43, %s3798_s7 }
 0x169   :  { %2482 = vrot.lane.b32.xlu0 %v1546_v37, %s3800_s17  ;;  %2450 = vrot.lane.b32.xlu1 %v1418_v29, %s3801_s23  ;;  %v1805_v30 = vpop.f32.mrf.mxu3 }
 0x16a   :  { %v2295_v46 = vpop.permute.xlu2 %2294 }
 0x16b   :  { %v2217_v48 = vpop.permute.xlu1 %2216  ;;  %v2235_v49 = vpop.permute.xlu0 %2234 }
 0x16c   :  { %v2352_v50 = vsel %vm2350_vm10, %v2347_v27, %v2217_v48  ;;  %v1677_v26 = vpop.f32.mrf.mxu1 }
 0x16d   :  { %v2357_v52 = vsel %vm2355_vm11, %v2352_v50, %v2233_v7  ;;  %v1610_v11 = vpop.f32.mrf.mxu0  ;;  %v1738_v19 = vpop.f32.mrf.mxu2 }
 0x170   :  { %2468 = vrot.lane.b32.xlu2 %v1485_v47, %s3799_s16 }
 0x171   :  { %2484 = vrot.lane.b32.xlu0 %v1549_v51, %s3800_s17  ;;  %2452 = vrot.lane.b32.xlu1 %v1421_v45, %s3801_s23  ;;  %v1807_v48 = vpop.f32.mrf.mxu3 }
 0x172   :  { %v2281_v24 = vpop.permute.xlu2 %2280 }
 0x173   :  { %v2203_v57 = vpop.permute.xlu1 %2202  ;;  %v2221_v58 = vpop.permute.xlu0 %2220 }
 0x174   :  { %v2348_v59 = vsel %vm52_vm1, %v2344_v42, %v2203_v57  ;;  %v1679_v39 = vpop.f32.mrf.mxu1 }
 0x175   :  { %v2353_v61 = vsel %vm2350_vm10, %v2348_v59, %v2219_v15  ;;  %v1741_v28 = vpop.f32.mrf.mxu2 }
 0x176   :  { %v2358_v0 = vsel %vm2355_vm11, %v2353_v61, %v2235_v49 }
 0x178   :  { %2454 = vrot.lane.b32.xlu2 %v1423_v55, %s3801_s23 }
 0x179   :  { %2470 = vrot.lane.b32.xlu0 %v1487_v56, %s3799_s16  ;;  %2438 = vrot.lane.b32.xlu1 %v1359_v53, %s3798_s7  ;;  %v2056_v59 = vpop.f32.mrf.mxu3 }
 0x17a   :  { %v2267_v2 = vpop.permute.xlu2 %2266 }
 0x17b   :  { %v2263_v3 = vpop.permute.xlu0 %2262  ;;  %v2189_v4 = vpop.permute.xlu1 %2188 }
 0x17c   :  { %v2366_v32 = vsel %vm2365_vm13, %v2361_v60, %v2263_v3  ;;  %v2345_v6 = vsel %vm2341_vm9, %v4552_v22, %v2189_v4  ;;  %v1613_v22 = vpop.f32.mrf.mxu0 }
 0x17d   :  { %v2349_v7 = vsel %vm52_vm1, %v2345_v6, %v2205_v23 }
 0x17e   :  { %v2354_v9 = vsel %vm2350_vm10, %v2349_v7, %v2221_v58 }
 0x180   :  { %2528 = vrot.lane.b32.xlu2 %v1736_v8, %s3803_s15 }
 0x181   :  { %2486 = vrot.lane.b32.xlu1 %v1551_v62, %s3800_s17  ;;  %2496 = vrot.lane.b32.xlu0 %v1608_v63, %s3804_s30 }
 0x182   :  { %v2253_v12 = vpop.permute.xlu2 %2252 }
 0x183   :  { %v2237_v14 = vpop.permute.xlu1 %2236  ;;  %v2249_v15 = vpop.permute.xlu0 %2248 }
 0x184   :  { %v2359_v16 = vsel %vm2355_vm11, %v2354_v9, %v2237_v14  ;;  %v2362_v17 = vsel %vm2360_vm12, %v2357_v52, %v2249_v15  ;;  %v1615_v37 = vpop.f32.mrf.mxu0  ;;  %v1928_v52 = vpop.f32.mrf.mxu1 }
 0x185   :  { %v2364_v18 = vsel %vm2360_vm12, %v2359_v16, %v2253_v12 }
 0x188   :  { %2514 = vrot.lane.b32.xlu2 %v1674_v13, %s3802_s14 }
 0x189   :  { %2512 = vrot.lane.b32.xlu1 %v1672_v1, %s3802_s14  ;;  %2544 = vrot.lane.b32.xlu0 %v1800_v10, %s3805_s5  ;;  %v2058_v10 = vpop.f32.mrf.mxu3 }
 0x18a   :  { %v2301_v21 = vpop.permute.xlu2 %2300 }
 0x18b   :  { %v2279_v23 = vpop.permute.xlu1 %2278  ;;  %v2297_v40 = vpop.permute.xlu0 %2296 }
 0x18c   :  { %v2371_v25 = vsel %vm2370_vm14, %v2366_v32, %v2279_v23  ;;  %v1864_v50 = vpop.f32.mrf.mxu0 }
 0x18d   :  { %v4597_v27 = vsel %vm2375_vm15, %v2371_v25, %v2295_v46  ;;  %v1743_v46 = vpop.f32.mrf.mxu2 }
 0x190   :  { %2516 = vrot.lane.b32.xlu2 %v1677_v26, %s3802_s14 }
 0x191   :  { %2530 = vrot.lane.b32.xlu0 %v1738_v19, %s3803_s15  ;;  %2498 = vrot.lane.b32.xlu1 %v1610_v11, %s3804_s30 }
 0x192   :  { %v2417_v29 = vpop.permute.xlu2 %2416 }
 0x193   :  { %v2265_v33 = vpop.permute.xlu1 %2264  ;;  %v2283_v34 = vpop.permute.xlu0 %2282 }
 0x194   :  { %v2367_v35 = vsel %vm2365_vm13, %v2362_v17, %v2265_v33  ;;  %v1866_v57 = vpop.f32.mrf.mxu0 }
 0x195   :  { %v2372_v36 = vsel %vm2370_vm14, %v2367_v35, %v2281_v24  ;;  %v1992_v56 = vpop.f32.mrf.mxu2 }
 0x196   :  { %v4605_v38 = vsel %vm2375_vm15, %v2372_v36, %v2297_v40 }
 0x198   :  { %2502 = vrot.lane.b32.xlu2 %v1615_v37, %s3804_s30 }
 0x199   :  { %2532 = vrot.lane.b32.xlu0 %v1741_v28, %s3803_s15  ;;  %2546 = vrot.lane.b32.xlu1 %v1802_v20, %s3805_s5 }
 0x19a   :  { %v2403_v41 = vpop.permute.xlu2 %2402 }
 0x19b   :  { %v2269_v42 = vpop.permute.xlu0 %2268  ;;  %v2251_v43 = vpop.permute.xlu1 %2250 }
 0x19c   :  { %v2369_v60 = vsel %vm2365_vm13, %v2364_v18, %v2269_v42  ;;  %v2363_v45 = vsel %vm2360_vm12, %v2358_v0, %v2251_v43  ;;  %v1930_v0 = vpop.f32.mrf.mxu1  ;;  %v1869_v9 = vpop.f32.mrf.mxu0 }
 0x19d   :  { %v2368_v47 = vsel %vm2365_vm13, %v2363_v45, %v2267_v2  ;;  %v1994_v25 = vpop.f32.mrf.mxu2 }
 0x19e   :  { %v2373_v49 = vsel %vm2370_vm14, %v2368_v47, %v2283_v34 }
 0x1a0   :  { %2550 = vrot.lane.b32.xlu2 %v1807_v48, %s3805_s5 }
 0x1a1   :  { %2518 = vrot.lane.b32.xlu0 %v1679_v39, %s3802_s14  ;;  %2500 = vrot.lane.b32.xlu1 %v1613_v22, %s3804_s30 }
 0x1a2   :  { %v2389_v51 = vpop.permute.xlu2 %2388 }
 0x1a3   :  { %v2385_v53 = vpop.permute.xlu0 %2384  ;;  %v2299_v55 = vpop.permute.xlu1 %2298  ;;  %v2622_v3 = vsel %vm2306_vm2, %v4525_v54, %v2389_v51 }
 0x1a4   :  { %v4618_v24 = vsel %vm2375_vm15, %v2373_v49, %v2299_v55  ;;  %v2620_v4 = vsel %vm2306_vm2, %v4498_v31, %v2385_v53  ;;  %v1933_v12 = vpop.f32.mrf.mxu1  ;;  %v1871_v16 = vpop.f32.mrf.mxu0 }
 0x1a5   :  { %v1997_v37 = vpop.f32.mrf.mxu2 }
 0x1a8   :  { %2576 = vrot.lane.b32.xlu2 %v1928_v52, %s3807_s10 }
 0x1a9   :  { %2592 = vrot.lane.b32.xlu0 %v1992_v56, %s3809_s25  ;;  %2548 = vrot.lane.b32.xlu1 %v1805_v30, %s3805_s5 }
 0x1aa   :  { %v2423_v58 = vpop.permute.xlu2 %2422 }
 0x1ab   :  { %v2419_v61 = vpop.permute.xlu0 %2418  ;;  %v2285_v62 = vpop.permute.xlu1 %2284 }
 0x1ac   :  { %v2374_v63 = vsel %vm2370_vm14, %v2369_v60, %v2285_v62  ;;  %v1935_v23 = vpop.f32.mrf.mxu1 }
 0x1ad   :  { %v4625_v1 = vsel %vm2375_vm15, %v2374_v63, %v2301_v21  ;;  %v1999_v43 = vpop.f32.mrf.mxu2 }
 0x1b0   :  { %2562 = vrot.lane.b32.xlu2 %v1866_v57, %s3806_s9 }
 0x1b1   :  { %2578 = vrot.lane.b32.xlu0 %v1930_v0, %s3807_s10  ;;  %2534 = vrot.lane.b32.xlu1 %v1743_v46, %s3803_s15 }
 0x1b2   :  { %v2465_v2 = vpop.permute.xlu2 %2464 }
 0x1b3   :  { %v2405_v32 = vpop.permute.xlu0 %2404  ;;  %v2401_v6 = vpop.permute.xlu1 %2400 }
 0x1b4   :  { %v2626_v7 = vsel %vm2311_vm3, %v2622_v3, %v2405_v32  ;;  %v2624_v8 = vsel %vm2311_vm3, %v2620_v4, %v2401_v6 }
 0x1b5   :  { %v2628_v11 = vsel %vm2316_vm4, %v2624_v8, %v2417_v29 }
 0x1b8   :  { %2610 = vrot.lane.b32.xlu2 %v2058_v10, %s3808_s1 }
 0x1b9   :  { %2580 = vrot.lane.b32.xlu0 %v1933_v12, %s3807_s10  ;;  %2560 = vrot.lane.b32.xlu1 %v1864_v50, %s3806_s9 }
 0x1ba   :  { %v2481_v54 = vpop.permute.xlu2 %2480 }
 0x1bb   :  { %v2391_v13 = vpop.permute.xlu0 %2390  ;;  %v2387_v31 = vpop.permute.xlu1 %2386 }
 0x1bc   :  { %v2621_v14 = vsel %vm2306_vm2, %v4514_v44, %v2387_v31  ;;  %v2061_v44 = vpop.f32.mrf.mxu3  ;;  %v2623_v26 = vsel %vm2306_vm2, %v4538_v5, %v2391_v13 }
 0x1bd   :  { %v2625_v15 = vsel %vm2311_vm3, %v2621_v14, %v2403_v41 }
 0x1be   :  { %v2629_v17 = vsel %vm2316_vm4, %v2625_v15, %v2419_v61 }
 0x1c0   :  { %2564 = vrot.lane.b32.xlu2 %v1869_v9, %s3806_s9 }
 0x1c1   :  { %2608 = vrot.lane.b32.xlu1 %v2056_v59, %s3808_s1  ;;  %2566 = vrot.lane.b32.xlu0 %v1871_v16, %s3806_s9 }
 0x1c2   :  { %v2437_v20 = vpop.permute.xlu2 %2436 }
 0x1c3   :  { %v2421_v18 = vpop.permute.xlu1 %2420  ;;  %v2433_v19 = vpop.permute.xlu0 %2432 }
 0x1c4   :  { %v2630_v21 = vsel %vm2316_vm4, %v2626_v7, %v2421_v18  ;;  %v2632_v22 = vsel %vm2321_vm5, %v2628_v11, %v2433_v19  ;;  %v2063_v35 = vpop.f32.mrf.mxu3 }
 0x1c5   :  { %v2634_v40 = vsel %vm2321_vm5, %v2630_v21, %v2437_v20 }
 0x1c8   :  { %2582 = vrot.lane.b32.xlu2 %v1935_v23, %s3807_s10 }
 0x1c9   :  { %2594 = vrot.lane.b32.xlu1 %v1994_v25, %s3809_s25  ;;  %2612 = vrot.lane.b32.xlu0 %v2061_v44, %s3808_s1 }
 0x1ca   :  { %v2469_v60 = vpop.permute.xlu2 %2468 }
 0x1cb   :  { %v2407_v28 = vpop.permute.xlu1 %2406  ;;  %v2449_v29 = vpop.permute.xlu0 %2448 }
 0x1cc   :  { %v2627_v30 = vsel %vm2311_vm3, %v2623_v26, %v2407_v28  ;;  %v2636_v33 = vsel %vm2326_vm6, %v2632_v22, %v2449_v29 }
 0x1cd   :  { %v2640_v34 = vsel %vm2331_vm7, %v2636_v33, %v2465_v2  ;;  %v2631_v36 = vsel %vm2316_vm4, %v2627_v30, %v2423_v58 }
 0x1ce   :  { %v2644_v39 = vsel %vm2336_vm8, %v2640_v34, %v2481_v54 }
 0x1d0   :  { %2614 = vrot.lane.b32.xlu2 %v2063_v35, %s3808_s1 }
 0x1d1   :  { %2596 = vrot.lane.b32.xlu1 %v1997_v37, %s3809_s25 }
 0x1d2   :  { %v2455_v52 = vpop.permute.xlu2 %2454 }
 0x1d3   :  { %v2467_v41 = vpop.permute.xlu0 %2466  ;;  %v2435_v5 = vpop.permute.xlu1 %2434 }
 0x1d4   :  { %v2633_v42 = vsel %vm2321_vm5, %v2629_v17, %v2435_v5 }
 0x1d9   :  { %2598 = vrot.lane.b32.xlu1 %v1999_v43, %s3809_s25 }
 0x1da   :  { %v2529_v59 = vpop.permute.xlu2 %2528 }
 0x1db   :  { %v2483_v45 = vpop.permute.xlu0 %2482  ;;  %v2451_v46 = vpop.permute.xlu1 %2450 }
 0x1dc   :  { %v2637_v47 = vsel %vm2326_vm6, %v2633_v42, %v2451_v46 }
 0x1dd   :  { %v2641_v48 = vsel %vm2331_vm7, %v2637_v47, %v2467_v41 }
 0x1de   :  { %v2645_v49 = vsel %vm2336_vm8, %v2641_v48, %v2483_v45 }
 0x1e2   :  { %v2515_v4 = vpop.permute.xlu2 %2514 }
 0x1e3   :  { %v2485_v50 = vpop.permute.xlu0 %2484  ;;  %v2453_v51 = vpop.permute.xlu1 %2452 }
 0x1e4   :  { %v2638_v53 = vsel %vm2326_vm6, %v2634_v40, %v2453_v51 }
 0x1e5   :  { %v2642_v55 = vsel %vm2331_vm7, %v2638_v53, %v2469_v60 }
 0x1e6   :  { %v2646_v56 = vsel %vm2336_vm8, %v2642_v55, %v2485_v50 }
 0x1ea   :  { %v2517_v7 = vpop.permute.xlu2 %2516 }
 0x1eb   :  { %v2471_v57 = vpop.permute.xlu0 %2470  ;;  %v2439_v58 = vpop.permute.xlu1 %2438 }
 0x1ec   :  { %v2635_v61 = vsel %vm2321_vm5, %v2631_v36, %v2439_v58 }
 0x1ed   :  { %v2639_v62 = vsel %vm2326_vm6, %v2635_v61, %v2455_v52 }
 0x1ee   :  { %v2643_v63 = vsel %vm2331_vm7, %v2639_v62, %v2471_v57 }
 0x1f2   :  { %v2503_v10 = vpop.permute.xlu2 %2502 }
 0x1f3   :  { %v2487_v0 = vpop.permute.xlu1 %2486  ;;  %v2497_v2 = vpop.permute.xlu0 %2496 }
 0x1f4   :  { %v2647_v3 = vsel %vm2336_vm8, %v2643_v63, %v2487_v0  ;;  %v2648_v18 = vsel %vm2341_vm9, %v2644_v39, %v2497_v2 }
 0x1f5   :  { %v2651_v50 = vsel %vm2341_vm9, %v2647_v3, %v2503_v10 }
 0x1fa   :  { %v2551_v31 = vpop.permute.xlu2 %2550 }
 0x1fb   :  { %v2513_v32 = vpop.permute.xlu1 %2512  ;;  %v2545_v6 = vpop.permute.xlu0 %2544 }
 0x1fc   :  { %v2652_v19 = vsel %vm52_vm1, %v2648_v18, %v2513_v32 }
 0x1fd   :  { %v2656_v22 = vsel %vm2350_vm10, %v2652_v19, %v2529_v59 }
 0x1fe   :  { %v2660_v44 = vsel %vm2355_vm11, %v2656_v22, %v2545_v6 }
 0x202   :  { %v2577_v16 = vpop.permute.xlu2 %2576 }
 0x203   :  { %v2531_v8 = vpop.permute.xlu0 %2530  ;;  %v2499_v9 = vpop.permute.xlu1 %2498 }
 0x204   :  { %v2649_v25 = vsel %vm2341_vm9, %v2645_v49, %v2499_v9 }
 0x205   :  { %v2653_v30 = vsel %vm52_vm1, %v2649_v25, %v2515_v4 }
 0x206   :  { %v2657_v36 = vsel %vm2350_vm10, %v2653_v30, %v2531_v8 }
 0x20a   :  { %v2563_v21 = vpop.permute.xlu2 %2562 }
 0x20b   :  { %v2533_v11 = vpop.permute.xlu0 %2532  ;;  %v2547_v12 = vpop.permute.xlu1 %2546 }
 0x20c   :  { %v2661_v37 = vsel %vm2355_vm11, %v2657_v36, %v2547_v12 }
 0x20d   :  { %v2665_v41 = vsel %vm2360_vm12, %v2661_v37, %v2563_v21 }
 0x212   :  { %v2611_v29 = vpop.permute.xlu2 %2610 }
 0x213   :  { %v2519_v54 = vpop.permute.xlu0 %2518  ;;  %v2501_v13 = vpop.permute.xlu1 %2500 }
 0x214   :  { %v2650_v39 = vsel %vm2341_vm9, %v2646_v56, %v2501_v13  ;;  %v2655_v53 = vsel %vm52_vm1, %v2651_v50, %v2519_v54  ;;  %v2734_v50 = vld [vmem:[%s4732_s2] sm:$0x1] }
 0x215   :  { %v2654_v42 = vsel %vm52_vm1, %v2650_v39, %v2517_v7 }
 0x216   :  { %v2658_v48 = vsel %vm2350_vm10, %v2654_v42, %v2533_v11 }
 0x21a   :  { %v2565_v45 = vpop.permute.xlu2 %2564 }
 0x21b   :  { %v2549_v14 = vpop.permute.xlu1 %2548  ;;  %v2593_v15 = vpop.permute.xlu0 %2592 }
 0x21c   :  { %v2662_v49 = vsel %vm2355_vm11, %v2658_v48, %v2549_v14 }
 0x21d   :  { %v2666_v51 = vsel %vm2360_vm12, %v2662_v49, %v2565_v45 }
 0x222   :  { %v2583_v58 = vpop.permute.xlu2 %2582 }
 0x223   :  { %v2535_v17 = vpop.permute.xlu1 %2534  ;;  %v2579_v20 = vpop.permute.xlu0 %2578 }
 0x224   :  { %v2669_v43 = vsel %vm2365_vm13, %v2665_v41, %v2579_v20  ;;  %v2659_v57 = vsel %vm2350_vm10, %v2655_v53, %v2535_v17 }
 0x225   :  { %v2663_v62 = vsel %vm2355_vm11, %v2659_v57, %v2551_v31 }
 0x22a   :  { %v2615_v3 = vpop.permute.xlu2 %2614 }
 0x22b   :  { %v2561_v23 = vpop.permute.xlu1 %2560  ;;  %v2581_v26 = vpop.permute.xlu0 %2580 }
 0x22c   :  { %v2664_v40 = vsel %vm2360_vm12, %v2660_v44, %v2561_v23  ;;  %v2670_v55 = vsel %vm2365_vm13, %v2666_v51, %v2581_v26 }
 0x22d   :  { %v2668_v28 = vsel %vm2365_vm13, %v2664_v40, %v2577_v16  ;;  %v3811_v16 = vmov 32.0  }
 0x22e   :  { %v2672_v34 = vsel %vm2370_vm14, %v2668_v28, %v2593_v15  ;;  %3791 = vrcp.f32 %v3811_v16 }
 0x233   :  { %v2609_v33 = vpop.permute.xlu1 %2608  ;;  %v2567_v5 = vpop.permute.xlu0 %2566 }
 0x234   :  { %v2676_v35 = vsel %vm2375_vm15, %v2672_v34, %v2609_v33  ;;  %v2667_v63 = vsel %vm2360_vm12, %v2663_v62, %v2567_v5  ;;  %v3792_v18 = vpop.eup %3791 }
 0x235   :  { %2684 = vrot.lane.b32.xlu0 %v2676_v35, %s3810_s0  ;;  %v2671_v2 = vsel %vm2365_vm13, %v2667_v63, %v2583_v58  ;;  %v2724_v19 = vmul.f32 32.0, %v3792_v18  ;;  %vm2728_vm1 = vweird.f32 %v3792_v18 }
 0x23b   :  { %v2595_v60 = vpop.permute.xlu1 %2594  ;;  %v2613_v52 = vpop.permute.xlu0 %2612 }
 0x23c   :  { %v2673_v46 = vsel %vm2370_vm14, %v2669_v43, %v2595_v60 }
 0x23d   :  { %v2677_v47 = vsel %vm2375_vm15, %v2673_v46, %v2611_v29 }
 0x23e   :  { %2686 = vrot.lane.b32.xlu1 %v2677_v47, %s3810_s0 }
 0x243   :  { %v2597_v56 = vpop.permute.xlu1 %2596 }
 0x244   :  { %v2674_v59 = vsel %vm2370_vm14, %v2670_v55, %v2597_v56  ;;  %v2747_v55 = vld [vmem:[%s4733_s3] sm:$0x1] }
 0x245   :  { %v2678_v61 = vsel %vm2375_vm15, %v2674_v59, %v2613_v52 }
 0x246   :  { %2688 = vrot.lane.b32.xlu2 %v2678_v61, %s3810_s0 }
 0x24b   :  { %v2599_v0 = vpop.permute.xlu1 %2598 }
 0x24c   :  { %v2675_v4 = vsel %vm2370_vm14, %v2671_v2, %v2599_v0 }
 0x24d   :  { %v2679_v32 = vsel %vm2375_vm15, %v2675_v4, %v2615_v3 }
 0x24e   :  { %2690 = vrot.lane.b32.xlu0 %v2679_v32, %s3810_s0 }
 0x2a0   :  { %v2689_v7 = vpop.permute.xlu2 %2688 }
 0x2a1   :  { %v2699_v10 = vsel %vm2696_vm0, %v4618_v24, %v2689_v7 }
 0x2a2   :  { %v2712_v31 = vmul.f32 %v2699_v10, %v2699_v10 }
 0x2a7   :  { %v2685_v6 = vpop.permute.xlu0 %2684 }
 0x2a8   :  { %v2697_v8 = vsel %vm2696_vm0, %v4597_v27, %v2685_v6  ;;  %v2725_v27 = vsub.f32 1.0, %v2724_v19 }
 0x2a9   :  { %v2710_v12 = vmul.f32 %v2697_v8, %v2697_v8 }
 0x2aa   :  { %v2726_v44 = vmul.f32 %v3792_v18, %v2725_v27 }
 0x2ac   :  { %v2727_v29 = vadd.f32 %v3792_v18, %v2726_v44 }
 0x2ae   :  { %v2729_v36 = vsel %vm2728_vm1, %v3792_v18, %v2727_v29 }
 0x2b0   :  { %v2687_v9 = vpop.permute.xlu1 %2686 }
 0x2b1   :  { %v2698_v11 = vsel %vm2696_vm0, %v4605_v38, %v2687_v9 }
 0x2b2   :  { %v2701_v54 = vadd.f32 %v2698_v11, %v2697_v8  ;;  %v2711_v13 = vmul.f32 %v2698_v11, %v2698_v11 }
 0x2b4   :  { %v2714_v14 = vadd.f32 %v2711_v13, %v2710_v12  ;;  %v2702_v15 = vadd.f32 %v2701_v54, %v2699_v10 }
 0x2b6   :  { %v2715_v17 = vadd.f32 %v2714_v14, %v2712_v31 }
 0x2c0   :  { %v2691_v20 = vpop.permute.xlu0 %2690 }
 0x2c1   :  { %v2700_v21 = vsel %vm2696_vm0, %v4625_v1, %v2691_v20 }
 0x2c2   :  { %v2703_v24 = vadd.f32 %v2702_v15, %v2700_v21  ;;  %v2713_v22 = vmul.f32 %v2700_v21, %v2700_v21 }
 0x2c4   :  { %v2704_v23 = vrot.slane %v2703_v24, 4  ;;  %v2716_v38 = vadd.f32 %v2715_v17, %v2713_v22 }
 0x2c6   :  { %v2705_v40 = vadd.f32 %v2704_v23, %v2703_v24  ;;  %v2717_v25 = vrot.slane %v2716_v38, 4 }
 0x2c8   :  { %v2706_v26 = vrot.slane %v2705_v40, 2  ;;  %v2718_v28 = vadd.f32 %v2717_v25, %v2716_v38 }
 0x2ca   :  { %v2707_v30 = vadd.f32 %v2706_v26, %v2705_v40  ;;  %v2719_v33 = vrot.slane %v2718_v28, 2 }
 0x2cc   :  { %v2708_v34 = vrot.slane %v2707_v30, 1  ;;  %v2720_v35 = vadd.f32 %v2719_v33, %v2718_v28 }
 0x2ce   :  { %v2709_v37 = vadd.f32 %v2708_v34, %v2707_v30  ;;  %v2721_v39 = vrot.slane %v2720_v35, 1 }
 0x2d0   :  { %v2722_v41 = vadd.f32 %v2721_v39, %v2720_v35  ;;  %v2730_v1 = vmul.f32 %v2729_v36, %v2709_v37 }
 0x2d2   :  { %v2731_v5 = vmul.f32 %v2729_v36, %v2722_v41  ;;  %v2732_v42 = vmul.f32 %v2730_v1, %v2730_v1 }
 0x2d4   :  { %v2733_v43 = vsub.f32 %v2731_v5, %v2732_v42 }
 0x2d6   :  { %v2735_v60 = vadd.f32 1e-05, %v2733_v43 }
 0x2d8   :  { %3793 = vrsqrt.f32 %v2735_v60  ;;  %vm2742_vm3 = vweird.f32 %v2735_v60 }
 0x2de   :  { %v3794_v45 = vpop.eup %3793 }
 0x2df   :  { %v2737_v46 = vmul.f32 %v3794_v45, %v2735_v60  ;;  %vm2743_vm2 = vweird.f32 %v3794_v45 }
 0x2e0   :  { %vm2744_vm4 = vmor %vm2742_vm3, %vm2743_vm2 }
 0x2e1   :  { %v2738_v47 = vmul.f32 %v3794_v45, %v2737_v46 }
 0x2e3   :  { %v2739_v48 = vmul.f32 0.5, %v2738_v47 }
 0x2e5   :  { %v2740_v49 = vsub.f32 1.5, %v2739_v48 }
 0x2e7   :  { %v2741_v51 = vmul.f32 %v3794_v45, %v2740_v49 }
 0x2e9   :  { %v2745_v52 = vsel %vm2744_vm4, %v3794_v45, %v2741_v51 }
 0x2ea   :  { %v2746_v53 = vmul.f32 %v2745_v52, %v2734_v50 }
 0x2ec   :  { %v2748_v56 = vmul.f32 %v2746_v53, %v2730_v1  ;;  %v2751_v57 = vperm.slane %v2746_v53, 0 }
 0x2ee   :  { %v2749_v58 = vsub.f32 %v2747_v55, %v2748_v56  ;;  %v2753_v59 = vmul.f32 %v2751_v57, %v2697_v8  ;;  %v2754_v61 = vmul.f32 %v2751_v57, %v2698_v11  ;;  %v2755_v62 = vmul.f32 %v2751_v57, %v2699_v10 }
 0x2ef   :  { %v2756_v63 = vmul.f32 %v2751_v57, %v2700_v21 }
 0x2f0   :  { %v2758_v0 = vperm.slane %v2749_v58, 0 }
 0x2f2   :  { %v2760_v2 = vadd.f32 %v2758_v0, %v2753_v59  ;;  %v2761_v3 = vadd.f32 %v2758_v0, %v2754_v61  ;;  %v2762_v4 = vadd.f32 %v2758_v0, %v2755_v62  ;;  %v2763_v32 = vadd.f32 %v2758_v0, %v2756_v63 }
 0x2f4   :  { %v2764_v6 = vmax.f32 %v2760_v2, 0.0  ;;  %v2765_v7 = vmax.f32 %v2761_v3, 0.0  ;;  %v2766_v9 = vmax.f32 %v2762_v4, 0.0  ;;  %v2767_v12 = vmax.f32 %v2763_v32, 0.0 }
 0x2f6   :  { %v3766_v54 = vpack.c.bf16 %v2765_v7, %v2764_v6  ;;  %v3771_v13 = vpack.c.bf16 %v2767_v12, %v2766_v9 }
 0x2f8   :  { %3767 = vst [vmem:[%s4734_s4] sm:$0xff] %v3766_v54  }
 0x2f9   :  { %3773 = vst [vmem:[%s4734_s4 + $0x8] sm:$0xff] %v3771_v13  }

</bundles_post_ra>
